<compile_context>
chip_gen: v6e
topology: v6e:2x2x1
jax: 0.10.0
libtpu: 0.0.40
codegen_flags: <defaults>
</compile_context>

<pallas_src>
import jax
import jax.numpy as jnp
from jax.experimental import pallas as pl
from jax.experimental.pallas import tpu as pltpu


def _round_up(x, m):
    return ((x + m - 1) // m) * m


def _vmem_capacity_bytes():
    """Physical VMEM per core; conservative 64 MiB (v7x) fallback."""
    try:
        info = pltpu.get_tpu_info()
        cap = getattr(info, "vmem_capacity_bytes", None)
        if cap:
            return int(cap)
    except Exception:
        pass
    return 64 * 1024 * 1024


def _vmem_block_bytes(tb, ts, D, in_bytes, w_bytes, f_bytes):
    """Estimate of the double-buffered VMEM working set for one grid step."""
    dbl = 2  # pipeline double-buffering of every BlockSpec-managed block
    x_blk = dbl * tb * D * in_bytes
    bias_blk = dbl * 1 * D * 4
    wenc_blk = dbl * D * ts * w_bytes
    benc_blk = dbl * 1 * ts * 4
    wdec_blk = dbl * ts * D * w_bytes
    xhat_blk = dbl * tb * D * in_bytes
    f_blk = dbl * tb * ts * f_bytes
    xc_scr = tb * D * w_bytes
    acc_scr = tb * D * 4
    return (x_blk + bias_blk + wenc_blk + benc_blk + wdec_blk
            + xhat_blk + f_blk + xc_scr + acc_scr)


def ae_kernel(x_ref, bias_ref, wenc_ref, benc_ref, wdec_ref,
              xhat_ref, f_ref, xc_ref, acc_ref):
    # x_ref:    (TB, D)        input activations tile (batch block i)
    # bias_ref: (1, D)  f32    shared "pre-bias"
    # wenc_ref: (D, TS) bf16   encoder weight column block (= encoder.weight.T[:, j])
    # benc_ref: (1, TS) f32    encoder bias block
    # wdec_ref: (TS, D) bf16   decoder weight row block  (= decoder.weight.T[j, :])
    # xhat_ref: (TB, D)        output tile (resident across the S axis)
    # f_ref:    (TB, TS) bf16  feature output tile (lane-dense)
    # xc_ref:   (TB, D) bf16   centered-x scratch (computed once per batch tile)
    # acc_ref:  (TB, D) f32    x_hat accumulator scratch
    j = pl.program_id(1)

    @pl.when(j == 0)
    def _():
        xc = x_ref[...].astype(jnp.float32) - bias_ref[...]
        xc_ref[...] = xc.astype(xc_ref.dtype)
        acc_ref[...] = jnp.zeros_like(acc_ref)

    f = jnp.maximum(
        jnp.dot(xc_ref[...], wenc_ref[...],
                preferred_element_type=jnp.float32) + benc_ref[...],
        0.0)                                                          # (TB, TS)
    f_ref[...] = f.astype(f_ref.dtype)

    acc_ref[...] += jnp.dot(f.astype(wdec_ref.dtype), wdec_ref[...],
                            preferred_element_type=jnp.float32)       # (TB, D)

    @pl.when(j == pl.num_programs(1) - 1)
    def _():
        xhat_ref[...] = (acc_ref[...] + bias_ref[...]).astype(xhat_ref.dtype)


def init_autoencoder_params(key, activation_dim, dict_size, dtype=jnp.float32):
    """Deterministic synthetic init mirroring AutoEncoder.__init__ (f32)."""
    k_w, k_benc = jax.random.split(key)
    w = jax.random.normal(k_w, (activation_dim, dict_size), dtype=dtype)
    w = w / jnp.linalg.norm(w, axis=0, keepdims=True) * 0.1
    bias = jnp.zeros((activation_dim,), dtype=dtype)     # self.bias = zeros
    wenc_t = w                                            # encoder.weight.T -> (D, S)
    wdec_t = w.T                                          # decoder.weight.T -> (S, D)
    bound = 1.0 / jnp.sqrt(jnp.asarray(activation_dim, dtype))
    b_enc = jax.random.uniform(k_benc, (dict_size,), dtype=dtype,
                               minval=-bound, maxval=bound)
    return bias, wenc_t, b_enc, wdec_t


def prepare_autoencoder_params(bias, wenc_t, b_enc, wdec_t, *,
                               param_dtype=jnp.bfloat16,
                               f_dtype=jnp.bfloat16,
                               max_tile_b=512):
    """One-time conversion: cast weights to bf16, pad S, pick VMEM-aware tiles."""
    D, S = wenc_t.shape
    assert wdec_t.shape == (S, D)

    in_bytes = 4                                  # x / x_hat sized as f32 (conservative)
    w_bytes = jnp.dtype(param_dtype).itemsize
    f_bytes = jnp.dtype(f_dtype).itemsize

    vmem_cap = _vmem_capacity_bytes()
    # ~96-110 MiB on v5e/v6e (128 MiB VMEM), ~51 MiB on v7x (64 MiB VMEM).
    vmem_limit = int(min(vmem_cap * 0.8, 110 * 1024 * 1024))
    budget = int(vmem_limit * 0.85)               # headroom for compiler scratch

    s_full = _round_up(S, 128)
    tile_b, tile_s = 8, 128
    done = False
    for tb in (512, 256, 128, 64, 32, 16, 8):
        if tb > max_tile_b:
            continue
        for cand in (1024, 512, 256, 128):
            ts = min(cand, s_full)
            if _vmem_block_bytes(tb, ts, D, in_bytes, w_bytes, f_bytes) <= budget:
                tile_b, tile_s = tb, ts
                done = True
                break
        if done:
            break

    S_pad = _round_up(S, tile_s)
    if S_pad != S:
        # Zero padding of W_enc columns AND b_enc guarantees padded dictionary
        # slots produce f == 0, so they contribute nothing to x_hat.
        wenc_t = jnp.pad(wenc_t, ((0, 0), (0, S_pad - S)))
        wdec_t = jnp.pad(wdec_t, ((0, S_pad - S), (0, 0)))
        b_enc = jnp.pad(b_enc, (0, S_pad - S))

    return dict(
        bias2=bias.reshape(1, D).astype(jnp.float32),
        benc2=b_enc.reshape(1, S_pad).astype(jnp.float32),
        wenc_t=wenc_t.astype(param_dtype),
        wdec_t=wdec_t.astype(param_dtype),
        activation_dim=D,
        dict_size=S,
        tile_s=tile_s,
        max_tile_b=tile_b,
        vmem_limit_bytes=vmem_limit,
        f_dtype=f_dtype,
    )


def autoencoder_forward(x, params):
    """
    x: [B, D] activations. Returns (x_hat [B, D] in x.dtype, f [B, S] in f_dtype).
    """
    bias2, benc2 = params["bias2"], params["benc2"]
    wenc_t, wdec_t = params["wenc_t"], params["wdec_t"]
    S, tile_s = params["dict_size"], params["tile_s"]
    f_dtype = params["f_dtype"]

    B, D = x.shape
    assert D == params["activation_dim"]
    S_pad = wenc_t.shape[1]

    # Batch tile: as large as the VMEM sizing allows, but capped so nb >= 2
    # (keeps both v7x TensorCores busy on the 'parallel' batch axis).
    tile_b = params["max_tile_b"]
    if B >= 16:
        tile_b = min(tile_b, _round_up(-(-B // 2), 8))
    tile_b = max(8, min(_round_up(B, 8), _round_up(tile_b, 8)))

    B_pad = _round_up(B, tile_b)
    if B_pad != B:
        x = jnp.pad(x, ((0, B_pad - B), (0, 0)))

    nb = B_pad // tile_b
    ns = S_pad // tile_s

    w_bytes = jnp.dtype(wenc_t.dtype).itemsize
    x_bytes = jnp.dtype(x.dtype).itemsize
    cost = pl.CostEstimate(
        flops=4 * B_pad * D * S_pad,
        transcendentals=0,
        bytes_accessed=(nb * 2 * D * S_pad * w_bytes          # streamed weights
                        + 2 * B_pad * D * x_bytes              # x + x_hat
                        + B_pad * S_pad * jnp.dtype(f_dtype).itemsize),  # f
    )

    x_hat, f = pl.pallas_call(
        ae_kernel,
        out_shape=(
            jax.ShapeDtypeStruct((B_pad, D), x.dtype),
            jax.ShapeDtypeStruct((B_pad, S_pad), f_dtype),
        ),
        grid_spec=pltpu.PrefetchScalarGridSpec(
            num_scalar_prefetch=0,
            grid=(nb, ns),
            in_specs=[
                pl.BlockSpec((tile_b, D), lambda i, j: (i, 0)),       # x tile
                pl.BlockSpec((1, D), lambda i, j: (0, 0)),            # bias
                pl.BlockSpec((D, tile_s), lambda i, j: (0, j)),       # W_enc^T cols
                pl.BlockSpec((1, tile_s), lambda i, j: (0, j)),       # b_enc block
                pl.BlockSpec((tile_s, D), lambda i, j: (j, 0)),       # W_dec^T rows
            ],
            out_specs=[
                pl.BlockSpec((tile_b, D), lambda i, j: (i, 0)),       # x_hat (resident over j)
                pl.BlockSpec((tile_b, tile_s), lambda i, j: (i, j)),  # f (lane-dense)
            ],
            scratch_shapes=[
                pltpu.VMEM((tile_b, D), wenc_t.dtype),    # centered x (bf16)
                pltpu.VMEM((tile_b, D), jnp.float32),     # x_hat accumulator
            ],
        ),
        compiler_params=pltpu.CompilerParams(
            dimension_semantics=("parallel", "arbitrary"),
            vmem_limit_bytes=params["vmem_limit_bytes"],
        ),
        cost_estimate=cost,
    )(x, bias2, wenc_t, benc2, wdec_t)

    return x_hat[:B], f[:B, :S]


if __name__ == "__main__":
    # Small demo shapes: batch=256 activations of dim 128, dictionary of 512.
    # Tile selection yields tile_s = 512 (S axis collapsed -> no accumulator
    # loop) and tile_b = 128 (nb = 2 -> both TCs busy on v7x).
    B, D, S = 256, 128, 512
    key = jax.random.PRNGKey(0)
    k_x, k_p = jax.random.split(key)

    x = jax.random.normal(k_x, (B, D), dtype=jnp.float32)
    bias, wenc_t, b_enc, wdec_t = init_autoencoder_params(k_p, D, S)
    params = prepare_autoencoder_params(bias, wenc_t, b_enc, wdec_t)

    x_hat, f = autoencoder_forward(x, params)
    x_hat = jax.block_until_ready(x_hat)
    f = jax.block_until_ready(f)

    # Pure-JAX reference matching the kernel's numerics (bf16 weights / bf16 f,
    # f32 accumulation); ghost_mask=None path of AutoEncoder.forward.
    wenc_f = params["wenc_t"][:, :S].astype(jnp.float32)
    wdec_f = params["wdec_t"][:S, :].astype(jnp.float32)
    xc = (x - bias).astype(jnp.bfloat16).astype(jnp.float32)
    f_ref = jnp.maximum(xc @ wenc_f + b_enc, 0.0)
    x_hat_ref = f_ref.astype(jnp.bfloat16).astype(jnp.float32) @ wdec_f + bias

    assert bool(jnp.allclose(f.astype(jnp.float32), f_ref, atol=1e-2, rtol=1e-2))
    assert bool(jnp.allclose(x_hat.astype(jnp.float32), x_hat_ref,
                             atol=1e-2, rtol=1e-2))

    print("KERNEL_OK")
</pallas_src>

<mosaic_0001>
module attributes {stable_mosaic.version = 11 : i64} {
  func.func @ae_kernel(%arg0: i32, %arg1: i32, %arg2: memref<128x128xf32, #tpu.memory_space<vmem>>, %arg3: memref<1x128xf32, #tpu.memory_space<vmem>>, %arg4: memref<128x512xbf16, #tpu.memory_space<vmem>>, %arg5: memref<1x512xf32, #tpu.memory_space<vmem>>, %arg6: memref<512x128xbf16, #tpu.memory_space<vmem>>, %arg7: memref<128x128xf32, #tpu.memory_space<vmem>>, %arg8: memref<128x512xbf16, #tpu.memory_space<vmem>>, %arg9: memref<128x128xbf16, #tpu.memory_space<vmem>>, %arg10: memref<128x128xf32, #tpu.memory_space<vmem>>) attributes {dimension_semantics = [#tpu.dimension_semantics<parallel>, #tpu.dimension_semantics<arbitrary>], iteration_bounds = array<i64: 2, 1>, scalar_prefetch = 0 : i64, scratch_operands = 2 : i64, tpu.core_type = #tpu.core_type<tc>, window_params = [{transform_indices = @transform_0, window_bounds = array<i64: 128, 128>}, {pipeline_mode = #tpu.pipeline_mode<synchronous>, transform_indices = @transform_1, window_bounds = array<i64: 1, 128>}, {transform_indices = @transform_2, window_bounds = array<i64: 128, 512>}, {transform_indices = @transform_3, window_bounds = array<i64: 1, 512>}, {transform_indices = @transform_4, window_bounds = array<i64: 512, 128>}, {transform_indices = @transform_5, window_bounds = array<i64: 128, 128>}, {transform_indices = @transform_6, window_bounds = array<i64: 128, 512>}]} {
    %c0_i32 = arith.constant 0 : i32
    %0 = arith.cmpi eq, %arg1, %c0_i32 : i32
    %1 = arith.extui %0 : i1 to i32
    %c0_i32_0 = arith.constant 0 : i32
    %2 = arith.cmpi ne, %1, %c0_i32_0 : i32
    scf.if %2 {
      %c0_18 = arith.constant 0 : index
      %c0_19 = arith.constant 0 : index
      %22 = vector.load %arg2[%c0_18, %c0_19] : memref<128x128xf32, #tpu.memory_space<vmem>>, vector<128x128xf32>
      %c0_20 = arith.constant 0 : index
      %c0_21 = arith.constant 0 : index
      %23 = vector.load %arg3[%c0_20, %c0_21] : memref<1x128xf32, #tpu.memory_space<vmem>>, vector<1x128xf32>
      %24 = vector.broadcast %23 : vector<1x128xf32> to vector<128x128xf32>
      %25 = arith.subf %22, %24 : vector<128x128xf32>
      %26 = arith.truncf %25 : vector<128x128xf32> to vector<128x128xbf16>
      %c0_22 = arith.constant 0 : index
      %c0_23 = arith.constant 0 : index
      %27 = vector.load %arg9[%c0_22, %c0_23] : memref<128x128xbf16, #tpu.memory_space<vmem>>, vector<128x128xbf16>
      tpu.vector_store %arg9[%c0_22, %c0_23], %26 {strides = array<i32>} : memref<128x128xbf16, #tpu.memory_space<vmem>>, vector<128x128xbf16>,
      %cst_24 = arith.constant 0.000000e+00 : f32
      %28 = vector.broadcast %cst_24 : f32 to vector<128x128xf32>
      %c0_25 = arith.constant 0 : index
      %c0_26 = arith.constant 0 : index
      %29 = vector.load %arg10[%c0_25, %c0_26] : memref<128x128xf32, #tpu.memory_space<vmem>>, vector<128x128xf32>
      tpu.vector_store %arg10[%c0_25, %c0_26], %28 {strides = array<i32>} : memref<128x128xf32, #tpu.memory_space<vmem>>, vector<128x128xf32>,
    } else {
    }
    %c0 = arith.constant 0 : index
    %c0_1 = arith.constant 0 : index
    %3 = vector.load %arg9[%c0, %c0_1] : memref<128x128xbf16, #tpu.memory_space<vmem>>, vector<128x128xbf16>
    %c0_2 = arith.constant 0 : index
    %c0_3 = arith.constant 0 : index
    %4 = vector.load %arg4[%c0_2, %c0_3] : memref<128x512xbf16, #tpu.memory_space<vmem>>, vector<128x512xbf16>
    %cst = arith.constant dense<0.000000e+00> : vector<128x512xf32>
    %5 = tpu.matmul %3, %4, %cst {dimension_numbers = #tpu.dot_dimension_numbers<[1], [0], [0], [1], [0, 0, 1, 1], [], []>} : vector<128x128xbf16>, vector<128x512xbf16>, vector<128x512xf32> -> vector<128x512xf32>
    %c0_4 = arith.constant 0 : index
    %c0_5 = arith.constant 0 : index
    %6 = vector.load %arg5[%c0_4, %c0_5] : memref<1x512xf32, #tpu.memory_space<vmem>>, vector<1x512xf32>
    %7 = vector.broadcast %6 : vector<1x512xf32> to vector<128x512xf32>
    %8 = arith.addf %5, %7 : vector<128x512xf32>
    %cst_6 = arith.constant 0.000000e+00 : f32
    %9 = vector.broadcast %cst_6 : f32 to vector<128x512xf32>
    %10 = arith.maximumf %8, %9 : vector<128x512xf32>
    %11 = arith.truncf %10 : vector<128x512xf32> to vector<128x512xbf16>
    %c0_7 = arith.constant 0 : index
    %c0_8 = arith.constant 0 : index
    %12 = vector.load %arg8[%c0_7, %c0_8] : memref<128x512xbf16, #tpu.memory_space<vmem>>, vector<128x512xbf16>
    tpu.vector_store %arg8[%c0_7, %c0_8], %11 {strides = array<i32>} : memref<128x512xbf16, #tpu.memory_space<vmem>>, vector<128x512xbf16>,
    %c0_9 = arith.constant 0 : index
    %c0_10 = arith.constant 0 : index
    %13 = vector.load %arg10[%c0_9, %c0_10] : memref<128x128xf32, #tpu.memory_space<vmem>>, vector<128x128xf32>
    %14 = arith.truncf %10 : vector<128x512xf32> to vector<128x512xbf16>
    %c0_11 = arith.constant 0 : index
    %c0_12 = arith.constant 0 : index
    %15 = vector.load %arg6[%c0_11, %c0_12] : memref<512x128xbf16, #tpu.memory_space<vmem>>, vector<512x128xbf16>
    %cst_13 = arith.constant dense<0.000000e+00> : vector<128x128xf32>
    %16 = tpu.matmul %14, %15, %cst_13 {dimension_numbers = #tpu.dot_dimension_numbers<[1], [0], [0], [1], [0, 0, 1, 1], [], []>} : vector<128x512xbf16>, vector<512x128xbf16>, vector<128x128xf32> -> vector<128x128xf32>
    %17 = arith.addf %13, %16 : vector<128x128xf32>
    %c0_14 = arith.constant 0 : index
    %c0_15 = arith.constant 0 : index
    %18 = vector.load %arg10[%c0_14, %c0_15] : memref<128x128xf32, #tpu.memory_space<vmem>>, vector<128x128xf32>
    tpu.vector_store %arg10[%c0_14, %c0_15], %17 {strides = array<i32>} : memref<128x128xf32, #tpu.memory_space<vmem>>, vector<128x128xf32>,
    %c0_i32_16 = arith.constant 0 : i32
    %19 = arith.cmpi eq, %arg1, %c0_i32_16 : i32
    %20 = arith.extui %19 : i1 to i32
    %c0_i32_17 = arith.constant 0 : i32
    %21 = arith.cmpi ne, %20, %c0_i32_17 : i32
    scf.if %21 {
      %c0_18 = arith.constant 0 : index
      %c0_19 = arith.constant 0 : index
      %22 = vector.load %arg10[%c0_18, %c0_19] : memref<128x128xf32, #tpu.memory_space<vmem>>, vector<128x128xf32>
      %c0_20 = arith.constant 0 : index
      %c0_21 = arith.constant 0 : index
      %23 = vector.load %arg3[%c0_20, %c0_21] : memref<1x128xf32, #tpu.memory_space<vmem>>, vector<1x128xf32>
      %24 = vector.broadcast %23 : vector<1x128xf32> to vector<128x128xf32>
      %25 = arith.addf %22, %24 : vector<128x128xf32>
      %c0_22 = arith.constant 0 : index
      %c0_23 = arith.constant 0 : index
      %26 = vector.load %arg7[%c0_22, %c0_23] : memref<128x128xf32, #tpu.memory_space<vmem>>, vector<128x128xf32>
      tpu.vector_store %arg7[%c0_22, %c0_23], %25 {strides = array<i32>} : memref<128x128xf32, #tpu.memory_space<vmem>>, vector<128x128xf32>,
    } else {
    }
    return
  }
  func.func @transform_0(%arg0: i32, %arg1: i32) -> (i32, i32) {
    %c0_i32 = arith.constant 0 : i32
    %c0_i32_0 = arith.constant 0 : i32
    return %arg0, %c0_i32 : i32, i32
  }
  func.func @transform_1(%arg0: i32, %arg1: i32) -> (i32, i32) {
    %c0_i32 = arith.constant 0 : i32
    %c0_i32_0 = arith.constant 0 : i32
    %c0_i32_1 = arith.constant 0 : i32
    return %c0_i32, %c0_i32_0 : i32, i32
  }
  func.func @transform_2(%arg0: i32, %arg1: i32) -> (i32, i32) {
    %c0_i32 = arith.constant 0 : i32
    %c0_i32_0 = arith.constant 0 : i32
    return %c0_i32, %arg1 : i32, i32
  }
  func.func @transform_3(%arg0: i32, %arg1: i32) -> (i32, i32) {
    %c0_i32 = arith.constant 0 : i32
    %c0_i32_0 = arith.constant 0 : i32
    return %c0_i32, %arg1 : i32, i32
  }
  func.func @transform_4(%arg0: i32, %arg1: i32) -> (i32, i32) {
    %c0_i32 = arith.constant 0 : i32
    %c0_i32_0 = arith.constant 0 : i32
    return %arg1, %c0_i32 : i32, i32
  }
  func.func @transform_5(%arg0: i32, %arg1: i32) -> (i32, i32) {
    %c0_i32 = arith.constant 0 : i32
    %c0_i32_0 = arith.constant 0 : i32
    return %arg0, %c0_i32 : i32, i32
  }
  func.func @transform_6(%arg0: i32, %arg1: i32) -> (i32, i32) {
    %c0_i32 = arith.constant 0 : i32
    return %arg0, %arg1 : i32, i32
  }
}

</mosaic_0001>

<bundles_post_ra>
// kernel: tpu_custom_call.1
= control target key start
LH: loop header
LB: loop body
LE: loop exit
PB: predicated region body
PF: predicated region fallthrough
CT: control target
= control target key end

     0   :  { %s3261_s0 = inlined_call_operand.hbm [shape: f32[256,128], index: 0, kind: input, shape index: {}]   ;;  %s3262_s1 = inlined_call_operand.vmem [shape: f32[1,128], index: 1, kind: input, shape index: {}]   ;;  %s3263_s2 = inlined_call_operand.hbm [shape: bf16[128,512], index: 2, kind: input, shape index: {}]   ;;  %s3264_s3 = inlined_call_operand.vmem [shape: f32[1,512], index: 3, kind: input, shape index: {}]   ;;  %s3265_s4 = inlined_call_operand.hbm [shape: bf16[512,128], index: 4, kind: input, shape index: {}]   ;;  %s3266_s5 = inlined_call_operand.hbm [shape: f32[256,128], index: 5, kind: output, shape index: {0}]   ;;  %s3267_s6 = inlined_call_operand.hbm [shape: bf16[256,512], index: 6, kind: output, shape index: {1}]  }
   0x1   :  { %3271 = sst [smem:[#allocation17_spill]] %s3263_s2 }
   0x2   :  { %3272 = sst [smem:[#allocation18_spill]] %s3265_s4 }
   0x3   :  { %12 = vsyncpa [#allocation5], 0 }
   0x4   :  { %14 = vsyncpa [#allocation5 + $0x1], 0 }
   0x5   :  { %15 = vsyncpa [#allocation8], 0 }
   0x6   :  { %16 = vsyncpa [#allocation6], 0 }
   0x7   :  { %18 = vsyncpa [#allocation6 + $0x1], 0 }
   0x8   :  { %19 = vsyncpa [#allocation12], 0 }
   0x9   :  { %21 = vsyncpa [#allocation12 + $0x1], 0  ;;  %s2850_s21 = smov 0   ;;  %s2852_s22 = smov 0  }
   0xa   :  { %s2854_s23 = smov 0   ;;  %s2856_s24 = smov 0  }
   0xb   :  { %s2858_s25 = smov 0   ;;  %s2860_s26 = smov 0  }
   0xc LB: > { %s2042_s27 = sadd.s32 4294967295, %s2797_s26   ;;  %s2043_s28 = sadd.s32 4294967294, %s2797_s26   ;;  %s2797_s26 = sphi %s2860_s26, %s27_s26   ;;  %s2793_s25 = sphi %s2858_s25, %s3291_s25   ;;  %s2789_s24 = sphi %s2856_s24, %s3290_s24   ;;  %s2785_s23 = sphi %s2854_s23, %s3289_s23   ;;  %s2781_s22 = sphi %s2852_s22, %s3288_s22   ;;  %s2777_s21 = sphi %s2850_s21, %s3287_s21  }
   0xd   : > { %p59_p0 = scmp.ne.s32.totalorder %s2781_s22, %s2777_s21  ;;  %p2884_p1 = scmp.eq.s32.totalorder %s2042_s27, 0 }
   0xe   : > { %p2888_p2 = scmp.eq.s32.totalorder %s2042_s27, 1  ;;  %p188_p3 = scmp.eq.s32.totalorder %s2043_s28, 1 }
   0xf   : > { %s3273_s29 = scalar_select %p2884_p1, 1, 0 }
  0x10   : > { %p2894_p4 = por %p2884_p1, %p59_p0  ;;  %p2044_p5 = scmp.ge.s32.totalorder %s2797_s26, 1 }
  0x11   : > { %p2899_p6 = por %p188_p3, %p59_p0  ;;  %p223_p7 = scmp.lt.s32.totalorder %s2797_s26, 3 }
  0x12   : > { %s3275_s7 = scalar_select %p2894_p4, 1, 0 }
  0x13   : > { %s3276_s8 = scalar_select %p2899_p6, 1, 0 }
  0x14   : > { %p2904_p8 = pnand %p2044_p5, %p223_p7  ;;  %s2799_s10 = smov [#allocation7]  }
  0x15   : > { %s241_s11 = sshll.u32 %s2799_s10, 4  ;;  %s2800_s13 = smov [#allocation9]   ;;  %s242_s11 = int_to_ptr.vmem [resolvable:$true] %s241_s11 }
  0x16   : > { %p2430_p9 = pneg %p2904_p8  ;;  %s265_s14 = sshll.u32 %s2800_s13, 4  ;;  %s266_s14 = int_to_ptr.vmem [resolvable:$true] %s265_s14 }
  0x17   : > { %s2614_s15 = scalar_lea.vmem %s242_s11, 4096  ;;  %p2622_p5 = scmp.lt.s32.totalorder %s242_s11, %s242_s11 }
  0x18   : > { %p2913_p11 = pnand %p2430_p9, %p2884_p1  ;;  %p2615_p13 = scmp.ne.s32.totalorder %s242_s11, %s2614_s15 }
  0x19   : > { %p2623_p7 = scmp.lt.s32.totalorder %s2614_s15, %s2614_s15 }
  0x1a   : > { %p2605_p12 = pneg %p2913_p11 }
  0x1b   : > { %p2624_p10 = por %p2623_p7, %p2622_p5 }
  0x1c   : > { %p2617_p0 = pnand %p2615_p13, %p2605_p12 }
  0x1e   : > { %p2618_p3 = pneg %p2617_p0 }
  0x20   : > { %p2625_p9 = pnand %p2624_p10, %p2618_p3 }
  0x22   : > { %2628 = shalt.err (!%p2625_p9)
}
  0x23   : > { %s2801_s16 = smov 256   ;;  %s2802_s17 = smov 16  }
  0x24   : > { %s3279_s2 = sld [smem:[#allocation17_spill]]  ;;  %s2640_s20 = scalar_lea.vmem %s266_s14, 4096 }
  0x25   : > { %p2641_p6 = scmp.ne.s32.totalorder %s266_s14, %s2640_s20  ;;  %p2648_p1 = scmp.lt.s32.totalorder %s266_s14, %s266_s14 }
  0x26   : > { %p2649_p4 = scmp.lt.s32.totalorder %s2640_s20, %s2640_s20 }
  0x27   : > { %p2643_p13 = pnand %p2641_p6, %p2605_p12 }
  0x28   : > { %p2650_p5 = por %p2649_p4, %p2648_p1 }
  0x29   : > { %p2644_p0 = pneg %p2643_p13 }
  0x2a   : > { %2433 = dma.hbm_to_vmem [thread:$0]  (!%p2913_p11), %s3279_s2, 4096, %s242_s11, [#allocation8], %s2801_s16, %s2801_s16, %s2802_s17  }
  0x2b   : > { %p2651_p10 = pnand %p2650_p5, %p2644_p0 }
  0x2d   : > { %2654 = shalt.err (!%p2651_p10)
}
  0x2e   : > { %s2803_s27 = smov 64   ;;  %s2804_s28 = smov 4  }
  0x2f   : > { %s3280_s4 = sld [smem:[#allocation18_spill]]  ;;  %s39_s13 = sadd.s32 1, %s2793_s25 }
  0x30   : > { %s46_s15 = sadd.s32 1, %s2785_s23  ;;  %p41_p1 = scmp.ge.s32.totalorder %s39_s13, 2 }
  0x31   : > { %p53_p4 = scmp.ne.s32.totalorder %s2785_s23, %s2781_s22  ;;  %p54_p6 = scmp.eq.s32.totalorder %s2797_s26, 0 }
  0x32   : > { %p2450_p12 = scmp.lt.s32.totalorder %s2797_s26, 2  ;;  %s3293_s13 = smov (%p41_p1, %s39_s13), 0 }
  0x33   : > { %p55_p3 = por %p54_p6, %p53_p4  ;;  %p2945_p7 = por %p2888_p2, %p53_p4 }
  0x34   : > { %s43_s12 = ssub.s32 %s2793_s25, %s3293_s13  ;;  %s279_s17 = sand.u32 1, %s2785_s23  }
  0x35   : > { %2436 = dma.hbm_to_vmem [thread:$0]  (!%p2913_p11), %s3280_s4, 4096, %s266_s14, [#allocation8], %s2803_s27, %s2803_s27, %s2804_s28  }
  0x36   : > { %p44_p9 = scmp.eq.s32.totalorder %s43_s12, 0  ;;  %s2049_s14 = sshll.u32 %s279_s17, 7 }
  0x37   : > { %s2189_s18 = sshll.u32 %s2793_s25, 11  ;;  %s283_s10 = scalar_lea.vmem [#allocation4], %s2049_s14 }
  0x38   : > { %s2954_s19 = scalar_select %p44_p9, %s2785_s23, %s46_s15  }
  0x39   : > { %s289_s28 = scalar_lea.hbm %s3261_s0, %s2189_s18  ;;  %s290_s11 = sshll.u32 %s283_s10, 4  ;;  %s291_s11 = int_to_ptr.vmem [resolvable:$true] %s290_s11 }
  0x3a   : > { %p2961_p11 = pnand %p2450_p12, %p55_p3  ;;  %s280_s2 = scalar_lea.sflag [#allocation5], %s279_s17 }
  0x3b   : > { %s2668_s12 = scalar_lea.vmem %s291_s11, 2048  ;;  %s2805_s15 = smov [#allocation4]  }
  0x3c   : > { %p2657_p2 = pneg %p2961_p11  ;;  %p2669_p13 = scmp.ne.s32.totalorder %s291_s11, %s2668_s12 }
  0x3d   : > { %s2673_s4 = sshll.u32 %s2805_s15, 4  ;;  %s2674_s4 = int_to_ptr.vmem [resolvable:$false] %s2673_s4 }
  0x3e   : > { %p2671_p0 = pnand %p2669_p13, %p2657_p2  ;;  %s2675_s18 = scalar_lea.vmem %s2674_s4, 4096 }
  0x3f   : > { %p2676_p10 = scmp.lt.s32.totalorder %s291_s11, %s2674_s4  ;;  %p2677_p1 = scmp.lt.s32.totalorder %s2675_s18, %s2668_s12 }
  0x40   : > { %p2672_p5 = pneg %p2671_p0 }
  0x41   : > { %p2678_p4 = por %p2677_p1, %p2676_p10 }
  0x43   : > { %p2679_p6 = pnand %p2678_p4, %p2672_p5 }
  0x45   : > { %2682 = shalt.err (!%p2679_p6)
}
  0x46   : > { %s2806_s14 = smov 128   ;;  %s2807_s20 = smov 8  }
  0x47   : > { %2440 = dma.hbm_to_vmem [thread:$0]  (!%p2961_p11), %s289_s28, 2048, %s291_s11, %s280_s2, %s2806_s14, %s2806_s14, %s2807_s20  }
  0x48   : > { %302 = sbr.rel (%p2904_p8) target bundleno = 597 (0x255), region = 40  ;;  %s2972_s17 = sand.u32 (!%p2904_p8), 1, %s2781_s22  }
  0x49   : > { %s2053_s4 = sshll.u32 (!%p2904_p8), %s2972_s17, 7  ;;  %s305_s27 = scalar_lea.sflag (!%p2904_p8), [#allocation5], %s2972_s17 }
  0x4a   : > { %s2978_s10 = scalar_lea.vmem (!%p2904_p8), [#allocation4], %s2053_s4  ;;  %p3283_p12 = scmp.ne.s32.totalorder (!%p2904_p8), %s3275_s7, 0 }
  0x4d   : > { %2760 = dma.done.wait (%p3283_p12), %s305_s27, 2048  }
  0x4e   : > { %2762 = vsyncadd (%p3283_p12), %s305_s27, 4294965248  ;;  %p3284_p3 = scmp.ne.s32.totalorder %s3273_s29, 0 }
  0x50   : > { %2764 = dma.done.wait (%p3284_p3), [#allocation8], 8192  }
  0x51   : > { %2766 = vsyncadd (%p3284_p3), [#allocation8], 4294959104  ;;  %v2808_v0 = vmov 0   ;;  %v2515_v1 = vld [vmem:[#allocation7 + $0xe4] ss:$16 sps:$4 sm:$0xff]   ;;  %v371_v28 = vld [vmem:[%s2978_s10 + $0x8] sm:$0xff] }
  0x52   : > { %815 = vmatprep.mubr.bf16.mxu0 %v2808_v0  ;;  %928 = vmatprep.mubr.bf16.mxu1 %v2808_v0  ;;  %v2517_v2 = vld [vmem:[#allocation7 + $0xec] ss:$16 sps:$4 sm:$0xff]   ;;  %v2519_v3 = vld [vmem:[#allocation7 + $0xe0] ss:$16 sps:$4 sm:$0xff]   ;;  %v2520_v4 = vld [vmem:[#allocation7 + $0xe8] ss:$16 sps:$4 sm:$0xff]  }
  0x53   : > { %783 = vmatprep.subr.bf16.mxu0 %v2515_v1  ;;  %896 = vmatprep.subr.bf16.mxu1 %v2517_v2  ;;  %v2521_v5 = vld [vmem:[#allocation7 + $0xc4] ss:$16 sps:$4 sm:$0xff]   ;;  %v2523_v6 = vld [vmem:[#allocation7 + $0xcc] ss:$16 sps:$4 sm:$0xff]   ;;  %v2525_v7 = vld [vmem:[#allocation7 + $0xc0] ss:$16 sps:$4 sm:$0xff]  }
  0x54   : > { %784 = vmatpush1.bf16.msra.mxu0 %v2519_v3  ;;  %897 = vmatpush1.bf16.msra.mxu1 %v2520_v4  ;;  %v2526_v8 = vld [vmem:[#allocation7 + $0xc8] ss:$16 sps:$4 sm:$0xff]   ;;  %v2527_v9 = vld [vmem:[#allocation7 + $0xa4] ss:$16 sps:$4 sm:$0xff]   ;;  %v2529_v10 = vld [vmem:[#allocation7 + $0xac] ss:$16 sps:$4 sm:$0xff]  }
  0x55   : > { %785 = vmatprep.subr.bf16.mxu0 %v2521_v5  ;;  %898 = vmatprep.subr.bf16.mxu1 %v2523_v6  ;;  %v2531_v11 = vld [vmem:[#allocation7 + $0xa0] ss:$16 sps:$4 sm:$0xff]   ;;  %v2532_v12 = vld [vmem:[#allocation7 + $0xa8] ss:$16 sps:$4 sm:$0xff]   ;;  %v2533_v13 = vld [vmem:[#allocation7 + $0x84] ss:$16 sps:$4 sm:$0xff]  }
  0x56   : > { %v2535_v14 = vld [vmem:[#allocation7 + $0x8c] ss:$16 sps:$4 sm:$0xff]   ;;  %v2537_v15 = vld [vmem:[#allocation7 + $0x80] ss:$16 sps:$4 sm:$0xff]   ;;  %v2538_v16 = vld [vmem:[#allocation7 + $0x88] ss:$16 sps:$4 sm:$0xff]  }
  0x57   : > { %v2539_v17 = vld [vmem:[#allocation7 + $0x64] ss:$16 sps:$4 sm:$0xff]   ;;  %v2541_v18 = vld [vmem:[#allocation7 + $0x6c] ss:$16 sps:$4 sm:$0xff]   ;;  %v2543_v19 = vld [vmem:[#allocation7 + $0x60] ss:$16 sps:$4 sm:$0xff]  }
  0x58   : > { %786 = vmatpush1.bf16.msra.mxu0 %v2525_v7  ;;  %899 = vmatpush1.bf16.msra.mxu1 %v2526_v8  ;;  %v2544_v20 = vld [vmem:[#allocation7 + $0x68] ss:$16 sps:$4 sm:$0xff]   ;;  %v2545_v21 = vld [vmem:[#allocation7 + $0x44] ss:$16 sps:$4 sm:$0xff]   ;;  %v2547_v22 = vld [vmem:[#allocation7 + $0x4c] ss:$16 sps:$4 sm:$0xff]  }
  0x59   : > { %787 = vmatprep.subr.bf16.mxu0 %v2527_v9  ;;  %900 = vmatprep.subr.bf16.mxu1 %v2529_v10  ;;  %v2549_v23 = vld [vmem:[#allocation7 + $0x40] ss:$16 sps:$4 sm:$0xff]   ;;  %v2550_v24 = vld [vmem:[#allocation7 + $0x48] ss:$16 sps:$4 sm:$0xff]   ;;  %v2551_v25 = vld [vmem:[#allocation7 + $0x24] ss:$16 sps:$4 sm:$0xff]  }
  0x5a   : > { %v2553_v26 = vld [vmem:[#allocation7 + $0x2c] ss:$16 sps:$4 sm:$0xff]   ;;  %v370_v27 = vld [vmem:[%s2978_s10] sm:$0xff]  ;;  %v2556_v30 = vld [vmem:[#allocation7 + $0x28] ss:$16 sps:$4 sm:$0xff]   ;;  %s2057_s28 = sshll.u32 %s2972_s17, 8 }
  0x5b   : > { %v2555_v29 = vld [vmem:[#allocation7 + $0x20] ss:$16 sps:$4 sm:$0xff]   ;;  %v373_v33 = vld [vmem:[%s2978_s10 + $0x18] sm:$0xff]  ;;  %v2557_v34 = vld [vmem:[#allocation7 + $0x4] ss:$16 sps:$4 sm:$0xff]   ;;  %s3043_s11 = scalar_lea.vmem [#allocation11], %s2057_s28 }
  0x5c   : > { %788 = vmatpush1.bf16.msra.mxu0 %v2531_v11  ;;  %901 = vmatpush1.bf16.msra.mxu1 %v2532_v12  ;;  %v2058_v31 = vld [vmem:[%s3262_s1] ss:$0 sm:$0xff]  ;;  %v372_v32 = vld [vmem:[%s2978_s10 + $0x10] sm:$0xff]  ;;  %v2559_v35 = vld [vmem:[#allocation7 + $0xc] ss:$16 sps:$4 sm:$0xff]   ;;  %s2240_s30 = sshll.u32 %s2789_s24, 12 }
  0x5d   : > { %789 = vmatprep.subr.bf16.mxu0 %v2533_v13  ;;  %902 = vmatprep.subr.bf16.mxu1 %v2535_v14  ;;  %v393_v36 = vsub.f32 %v370_v27, %v2058_v31  ;;  %v394_v37 = vsub.f32 %v371_v28, %v2058_v31  ;;  %v395_v38 = vsub.f32 %v372_v32, %v2058_v31  ;;  %v374_v40 = vld [vmem:[%s2978_s10 + $0x20] sm:$0xff]  ;;  %v375_v41 = vld [vmem:[%s2978_s10 + $0x28] sm:$0xff]  ;;  %v376_v42 = vld [vmem:[%s2978_s10 + $0x30] sm:$0xff]  ;;  %s1891_s12 = sshll.u32 %s3043_s11, 4  ;;  %s3138_s14 = scalar_lea.hbm %s3267_s6, %s2240_s30  ;;  %s3140_s12 = int_to_ptr.vmem [resolvable:$true] %s1891_s12 }
  0x5e   : > { %v396_v39 = vsub.f32 %v373_v33, %v2058_v31  ;;  %v397_v43 = vsub.f32 %v374_v40, %v2058_v31  ;;  %v398_v44 = vsub.f32 %v375_v41, %v2058_v31  ;;  %v377_v45 = vld [vmem:[%s2978_s10 + $0x38] sm:$0xff]  ;;  %v399_v46 = vsub.f32 %v376_v42, %v2058_v31  ;;  %v378_v47 = vld [vmem:[%s2978_s10 + $0x40] sm:$0xff]  ;;  %v379_v48 = vld [vmem:[%s2978_s10 + $0x48] sm:$0xff]  ;;  %s1859_s20 = scalar_lea.sflag [#allocation12], %s2972_s17  ;;  %s2683_s27 = scalar_lea.vmem %s3140_s12, 4096 }
  0x5f   : > { %v2244_v49 = vpack.c.bf16 %v394_v37, %v393_v36  ;;  %v400_v51 = vsub.f32 %v377_v45, %v2058_v31  ;;  %v380_v52 = vld [vmem:[%s2978_s10 + $0x50] sm:$0xff]  ;;  %v381_v53 = vld [vmem:[%s2978_s10 + $0x58] sm:$0xff]  ;;  %v382_v54 = vld [vmem:[%s2978_s10 + $0x60] sm:$0xff]  ;;  %v401_v57 = vsub.f32 %v378_v47, %v2058_v31  ;;  %v402_v58 = vsub.f32 %v379_v48, %v2058_v31  ;;  %p2684_p8 = scmp.ne.s32.totalorder %s3140_s12, %s2683_s27 }
  0x60   : > { %790 = vmatpush1.bf16.msra.mxu0 %v2537_v15  ;;  %903 = vmatpush1.bf16.msra.mxu1 %v2538_v16  ;;  %v2249_v50 = vpack.c.bf16 %v396_v39, %v395_v38  ;;  %v2561_v55 = vld [vmem:[#allocation7] ss:$16 sps:$4 sm:$0xff]   ;;  %v2254_v56 = vpack.c.bf16 %v398_v44, %v397_v43  ;;  %v403_v59 = vsub.f32 %v380_v52, %v2058_v31  ;;  %v383_v60 = vld [vmem:[%s2978_s10 + $0x68] sm:$0xff]  ;;  %v385_v62 = vld [vmem:[%s2978_s10 + $0x78] sm:$0xff] }
  0x61   : > { %791 = vmatprep.subr.bf16.mxu0 %v2539_v17  ;;  %904 = vmatprep.subr.bf16.mxu1 %v2541_v18  ;;  %v384_v61 = vld [vmem:[%s2978_s10 + $0x70] sm:$0xff]  ;;  %v2562_v63 = vld [vmem:[#allocation7 + $0x8] ss:$16 sps:$4 sm:$0xff]   ;;  %2245 = vst [vmem:[#allocation2] sm:$0xff] %v2244_v49   ;;  %v2259_v1 = vpack.c.bf16 %v400_v51, %v399_v46  ;;  %v404_v2 = vsub.f32 %v381_v53, %v2058_v31  ;;  %v2584_v27 = vld [vmem:[#allocation9 + $0xe0] sm:$0xff]   ;;  %v555_v51 = vlaneseq  ;;  %p2685_p9 = pnand %p2684_p8, %p2945_p7  ;;  %s2809_s10 = smov [#allocation11]  }
  0x62   : > { %2281 = vst [vmem:[#allocation2 + $0x8] sm:$0xff] %v2249_v50   ;;  %v405_v3 = vsub.f32 %v382_v54, %v2058_v31  ;;  %v406_v4 = vsub.f32 %v383_v60, %v2058_v31  ;;  %2282 = vst [vmem:[#allocation2 + $0x10] sm:$0xff] %v2254_v56   ;;  %v2264_v5 = vpack.c.bf16 %v402_v58, %v401_v57  ;;  %v2571_v8 = vld [vmem:[#allocation9 + $0x78] sm:$0xff]   ;;  %v2575_v15 = vld [vmem:[#allocation9 + $0x70] sm:$0xff]   ;;  %s2687_s2 = sshll.u32 %s2809_s10, 4  ;;  %s2688_s2 = int_to_ptr.vmem [resolvable:$false] %s2687_s2 }
  0x63   : > { %v407_v6 = vsub.f32 %v384_v61, %v2058_v31  ;;  %v408_v7 = vsub.f32 %v385_v62, %v2058_v31  ;;  %2283 = vst [vmem:[#allocation2 + $0x18] sm:$0xff] %v2259_v1   ;;  %v2269_v9 = vpack.c.bf16 %v404_v2, %v403_v59  ;;  %v2572_v11 = vld [vmem:[#allocation9 + $0xf8] sm:$0xff]   ;;  %v2576_v17 = vld [vmem:[#allocation9 + $0xf0] sm:$0xff]   ;;  %v2585_v28 = vld [vmem:[#allocation9 + $0x20] sm:$0xff]   ;;  %v556_v52 = vshrl.u32 %v555_v51, 7  ;;  %p2686_p11 = pneg %p2685_p9  ;;  %s2689_s29 = scalar_lea.vmem %s2688_s2, 8192 }
  0x64   : > { %792 = vmatpush1.bf16.msra.mxu0 %v2543_v19  ;;  %905 = vmatpush1.bf16.msra.mxu1 %v2544_v20  ;;  %v2274_v10 = vpack.c.bf16 %v406_v4, %v405_v3  ;;  %2284 = vst [vmem:[#allocation2 + $0x20] sm:$0xff] %v2264_v5   ;;  %v2573_v13 = vld [vmem:[#allocation9 + $0x38] sm:$0xff]   ;;  %v2577_v18 = vld [vmem:[#allocation9 + $0x30] sm:$0xff]   ;;  %v2595_v39 = vld [vmem:[#allocation9 + $0x48] sm:$0xff]   ;;  %p2690_p2 = scmp.lt.s32.totalorder %s3140_s12, %s2688_s2  ;;  %p2691_p13 = scmp.lt.s32.totalorder %s2689_s29, %s2683_s27 }
  0x65   : > { %793 = vmatprep.subr.bf16.mxu0 %v2545_v21  ;;  %906 = vmatprep.subr.bf16.mxu1 %v2547_v22  ;;  %v2279_v12 = vpack.c.bf16 %v408_v7, %v407_v6  ;;  %2285 = vst [vmem:[#allocation2 + $0x28] sm:$0xff] %v2269_v9   ;;  %v2574_v14 = vld [vmem:[#allocation9 + $0xb8] sm:$0xff]   ;;  %v2578_v20 = vld [vmem:[#allocation9 + $0xb0] sm:$0xff]   ;;  %v2579_v21 = vld [vmem:[#allocation9 + $0x68] sm:$0xff]   ;;  %v557_v53 = vsub.s32 0, %v556_v52  ;;  %v565_v54 = vsub.s32 2, %v556_v52 }
  0x66   : > { %2286 = vst [vmem:[#allocation2 + $0x30] sm:$0xff] %v2274_v10   ;;  %v2580_v22 = vld [vmem:[#allocation9 + $0xe8] sm:$0xff]   ;;  %v2588_v31 = vld [vmem:[#allocation9 + $0xd8] sm:$0xff]   ;;  %v2592_v36 = vld [vmem:[#allocation9 + $0xd0] sm:$0xff]   ;;  %v569_v56 = vsub.s32 3, %v556_v52  ;;  %p2692_p0 = por %p2691_p13, %p2690_p2 }
  0x67   : > { %2287 = vst [vmem:[#allocation2 + $0x38] sm:$0xff] %v2279_v12   ;;  %v2589_v32 = vld [vmem:[#allocation9 + $0x18] sm:$0xff]   ;;  %v2593_v37 = vld [vmem:[#allocation9 + $0x10] sm:$0xff]   ;;  %v2596_v40 = vld [vmem:[#allocation9 + $0xc8] sm:$0xff]  }
  0x68   : > { %794 = vmatpush1.bf16.msra.mxu0 %v2549_v23  ;;  %907 = vmatpush1.bf16.msra.mxu1 %v2550_v24  ;;  %v2563_v16 = vld [vmem:[#allocation2] sm:$0xff]   ;;  %v2581_v23 = vld [vmem:[#allocation9 + $0x28] sm:$0xff]   ;;  %v2594_v38 = vld [vmem:[#allocation9 + $0x90] sm:$0xff]   ;;  %p2693_p5 = pnand %p2692_p0, %p2686_p11 }
  0x69   : > { %795 = vmatprep.subr.bf16.mxu0 %v2551_v25  ;;  %908 = vmatprep.subr.bf16.mxu1 %v2553_v26  ;;  %v2564_v19 = vld [vmem:[#allocation2 + $0x8] sm:$0xff]   ;;  %v2565_v24 = vld [vmem:[#allocation2 + $0x10] sm:$0xff]   ;;  %v2583_v26 = vld [vmem:[#allocation9 + $0x60] sm:$0xff]  }
  0x6a   : > { %v2582_v25 = vld [vmem:[#allocation9 + $0xa8] sm:$0xff]   ;;  %v2566_v33 = vld [vmem:[#allocation2 + $0x18] sm:$0xff]   ;;  %v2599_v47 = vld [vmem:[#allocation9 + $0x40] sm:$0xff]  }
  0x6b   : > { %v2597_v41 = vld [vmem:[#allocation9 + $0x8] sm:$0xff]   ;;  %v2567_v43 = vld [vmem:[#allocation2 + $0x20] sm:$0xff]  }
  0x6c   : > { %796 = vmatpush1.bf16.msra.mxu0 %v2555_v29  ;;  %909 = vmatpush1.bf16.msra.mxu1 %v2556_v30  ;;  %v2586_v29 = vld [vmem:[#allocation9 + $0xa0] sm:$0xff]   ;;  %v2587_v30 = vld [vmem:[#allocation9 + $0x58] sm:$0xff]   ;;  %v2598_v42 = vld [vmem:[#allocation9 + $0x88] sm:$0xff]  }
  0x6d   : > { %797 = vmatprep.subr.bf16.mxu0 %v2557_v34  ;;  %910 = vmatprep.subr.bf16.mxu1 %v2559_v35  ;;  %v2590_v34 = vld [vmem:[#allocation9 + $0x98] sm:$0xff]   ;;  %v2591_v35 = vld [vmem:[#allocation9 + $0x50] sm:$0xff]   ;;  %v2568_v44 = vld [vmem:[#allocation2 + $0x28] sm:$0xff]  }
  0x6e   : > { %v2569_v45 = vld [vmem:[#allocation2 + $0x30] sm:$0xff]   ;;  %v2570_v46 = vld [vmem:[#allocation2 + $0x38] sm:$0xff]   ;;  %v2600_v48 = vld [vmem:[#allocation9 + $0xc0] sm:$0xff]  }
  0x6f   : > { %v2601_v49 = vld [vmem:[#allocation9] sm:$0xff]  }
  0x70   : > { %798 = vmatpush1.bf16.msra.mxu0 %v2561_v55  ;;  %911 = vmatpush1.bf16.msra.mxu1 %v2562_v63  ;;  %v2602_v50 = vld [vmem:[#allocation9 + $0x80] sm:$0xff]   ;;  %v561_v55 = vsub.s32 1, %v556_v52 }
  0x71   : > { %2288 = vmatprep.subr.bf16.mxu0 %v2571_v8  ;;  %2352 = vmatprep.subr.bf16.mxu1 %v2572_v11 }
  0x73   : > { %816 = vmatmul.mubr.bf16.vlgmr.msra.gmra.mxu0 %v2563_v16  ;;  %929 = vmatmul.mubr.bf16.vlgmr.msra.gmra.mxu1 %v2563_v16 }
  0x74   : > { %825 = vmatprep.mubr.bf16.mxu0 %v2808_v0  ;;  %938 = vmatprep.mubr.bf16.mxu1 %v2808_v0 }
  0x75   : > { %2289 = vmatpush3.bf16.msra.mxu0 %v2573_v13  ;;  %2353 = vmatpush3.bf16.msra.mxu1 %v2574_v14 }
  0x76   : > { %2290 = vmatprep.subr.bf16.mxu0 %v2575_v15  ;;  %2354 = vmatprep.subr.bf16.mxu1 %v2576_v17 }
  0x79   : > { %2291 = vmatpush3.bf16.msra.mxu0 %v2577_v18  ;;  %2355 = vmatpush3.bf16.msra.mxu1 %v2578_v20 }
  0x7a   : > { %2292 = vmatprep.subr.bf16.mxu0 %v2579_v21  ;;  %2356 = vmatprep.subr.bf16.mxu1 %v2580_v22 }
  0x7b   : > { %826 = vmatmul.mubr.bf16.gmra.mxu0 %v2564_v19  ;;  %939 = vmatmul.mubr.bf16.gmra.mxu1 %v2564_v19 }
  0x7c   : > { %835 = vmatprep.mubr.bf16.mxu0 %v2808_v0  ;;  %948 = vmatprep.mubr.bf16.mxu1 %v2808_v0 }
  0x7d   : > { %2293 = vmatpush3.bf16.msra.mxu0 %v2581_v23  ;;  %2357 = vmatpush3.bf16.msra.mxu1 %v2582_v25 }
  0x7e   : > { %2294 = vmatprep.subr.bf16.mxu0 %v2583_v26  ;;  %2358 = vmatprep.subr.bf16.mxu1 %v2584_v27 }
  0x81   : > { %2295 = vmatpush3.bf16.msra.mxu0 %v2585_v28  ;;  %2359 = vmatpush3.bf16.msra.mxu1 %v2586_v29 }
  0x82   : > { %2296 = vmatprep.subr.bf16.mxu0 %v2587_v30  ;;  %2360 = vmatprep.subr.bf16.mxu1 %v2588_v31 }
  0x83   : > { %836 = vmatmul.mubr.bf16.gmra.mxu0 %v2565_v24  ;;  %949 = vmatmul.mubr.bf16.gmra.mxu1 %v2565_v24 }
  0x84   : > { %845 = vmatprep.mubr.bf16.mxu0 %v2808_v0  ;;  %958 = vmatprep.mubr.bf16.mxu1 %v2808_v0 }
  0x85   : > { %2297 = vmatpush3.bf16.msra.mxu0 %v2589_v32  ;;  %2361 = vmatpush3.bf16.msra.mxu1 %v2590_v34 }
  0x86   : > { %2298 = vmatprep.subr.bf16.mxu0 %v2591_v35  ;;  %2362 = vmatprep.subr.bf16.mxu1 %v2592_v36 }
  0x89   : > { %2299 = vmatpush3.bf16.msra.mxu0 %v2593_v37  ;;  %2363 = vmatpush3.bf16.msra.mxu1 %v2594_v38 }
  0x8a   : > { %2300 = vmatprep.subr.bf16.mxu0 %v2595_v39  ;;  %2364 = vmatprep.subr.bf16.mxu1 %v2596_v40 }
  0x8b   : > { %846 = vmatmul.mubr.bf16.gmra.mxu0 %v2566_v33  ;;  %959 = vmatmul.mubr.bf16.gmra.mxu1 %v2566_v33 }
  0x8c   : > { %855 = vmatprep.mubr.bf16.mxu0 %v2808_v0  ;;  %968 = vmatprep.mubr.bf16.mxu1 %v2808_v0 }
  0x8d   : > { %2301 = vmatpush3.bf16.msra.mxu0 %v2597_v41  ;;  %2365 = vmatpush3.bf16.msra.mxu1 %v2598_v42 }
  0x8e   : > { %2302 = vmatprep.subr.bf16.mxu0 %v2599_v47  ;;  %2366 = vmatprep.subr.bf16.mxu1 %v2600_v48 }
  0x91   : > { %2303 = vmatpush3.bf16.msra.mxu0 %v2601_v49  ;;  %2367 = vmatpush3.bf16.msra.mxu1 %v2602_v50 }
  0x93   : > { %856 = vmatmul.mubr.bf16.gmra.mxu0 %v2567_v43  ;;  %969 = vmatmul.mubr.bf16.gmra.mxu1 %v2567_v43 }
  0x94   : > { %865 = vmatprep.mubr.bf16.mxu0 %v2808_v0  ;;  %978 = vmatprep.mubr.bf16.mxu1 %v2808_v0 }
  0x9b   : > { %866 = vmatmul.mubr.bf16.gmra.mxu0 %v2568_v44  ;;  %979 = vmatmul.mubr.bf16.gmra.mxu1 %v2568_v44 }
  0x9c   : > { %875 = vmatprep.mubr.bf16.mxu0 %v2808_v0  ;;  %988 = vmatprep.mubr.bf16.mxu1 %v2808_v0 }
  0xa3   : > { %876 = vmatmul.mubr.bf16.gmra.mxu0 %v2569_v45  ;;  %989 = vmatmul.mubr.bf16.gmra.mxu1 %v2569_v45 }
  0xa4   : > { %885 = vmatprep.mubr.bf16.mxu0 %v2808_v0  ;;  %998 = vmatprep.mubr.bf16.mxu1 %v2808_v0  ;;  %v553_v0 = vld [vmem:[%s3264_s3] sm:$0xf] }
  0xa5   : > { %v3026_v57 = vrot.slane %v553_v0, %v557_v53  ;;  %v3028_v58 = vrot.slane %v553_v0, %v565_v54  ;;  %v3030_v59 = vrot.slane %v553_v0, %v561_v55  ;;  %v3032_v60 = vrot.slane %v553_v0, %v569_v56 }
  0xab   : > { %886 = vmatmul.mubr.bf16.gmra.mxu0 %v2570_v46  ;;  %999 = vmatmul.mubr.bf16.gmra.mxu1 %v2570_v46 }
 0x133   : > { %v817_v61 = vpop.f32.mrf.mxu0  ;;  %v930_v62 = vpop.f32.mrf.mxu1 }
 0x134   : > { %v818_v63 = vadd.f32 %v817_v61, %v3026_v57  ;;  %v931_v1 = vadd.f32 %v930_v62, %v3028_v58 }
 0x135   : > { %v819_v2 = vpop.f32.mrf.mxu0  ;;  %v932_v3 = vpop.f32.mrf.mxu1 }
 0x136   : > { %v820_v4 = vadd.f32 %v819_v2, %v3030_v59  ;;  %v933_v5 = vadd.f32 %v932_v3, %v3032_v60  ;;  %v1009_v6 = vmax.f32 %v818_v63, 0.0  ;;  %v1011_v7 = vmax.f32 %v931_v1, 0.0 }
 0x137   : > { %v821_v8 = vpop.f32.mrf.mxu0  ;;  %v934_v9 = vpop.f32.mrf.mxu1 }
 0x138   : > { %v1010_v10 = vmax.f32 %v820_v4, 0.0  ;;  %v1012_v11 = vmax.f32 %v933_v5, 0.0  ;;  %v822_v12 = vadd.f32 %v821_v8, %v3026_v57  ;;  %v935_v13 = vadd.f32 %v934_v9, %v3028_v58 }
 0x139   : > { %v823_v14 = vpop.f32.mrf.mxu0  ;;  %v936_v15 = vpop.f32.mrf.mxu1 }
 0x13a   : > { %v2206_v16 = vpack.c.bf16 %v1010_v10, %v1009_v6  ;;  %v2207_v17 = vpack.c.bf16 %v1012_v11, %v1011_v7  ;;  %v1013_v18 = vmax.f32 %v822_v12, 0.0  ;;  %v1015_v19 = vmax.f32 %v935_v13, 0.0 }
 0x13b   : > { %v824_v20 = vadd.f32 %v823_v14, %v3030_v59  ;;  %v937_v21 = vadd.f32 %v936_v15, %v3032_v60  ;;  %v827_v22 = vpop.f32.mrf.mxu0  ;;  %v940_v23 = vpop.f32.mrf.mxu1 }
 0x13c   : > { %1265 = vst [vmem:[%s3043_s11] sm:$0xff] %v2206_v16  ;;  %1266 = vst [vmem:[%s3043_s11 + $0x8] sm:$0xff] %v2207_v17  ;;  %v828_v24 = vadd.f32 %v827_v22, %v3026_v57  ;;  %v941_v25 = vadd.f32 %v940_v23, %v3028_v58  ;;  %v1073_v26 = vpack.c.bf16 %v1013_v18, %v1009_v6 }
 0x13d   : > { %v1075_v27 = vpack.c.bf16 %v1015_v19, %v1011_v7  ;;  %v1014_v28 = vmax.f32 %v824_v20, 0.0  ;;  %v1016_v29 = vmax.f32 %v937_v21, 0.0  ;;  %v829_v30 = vpop.f32.mrf.mxu0  ;;  %v942_v31 = vpop.f32.mrf.mxu1 }
 0x13e   : > { %v1017_v32 = vmax.f32 %v828_v24, 0.0  ;;  %v1019_v33 = vmax.f32 %v941_v25, 0.0  ;;  %v830_v34 = vadd.f32 %v829_v30, %v3030_v59  ;;  %v943_v35 = vadd.f32 %v942_v31, %v3032_v60 }
 0x13f   : > { %v1074_v36 = vpack.c.bf16 %v1014_v28, %v1010_v10  ;;  %v2208_v37 = vpack.c.bf16 %v1014_v28, %v1013_v18  ;;  %v1076_v38 = vpack.c.bf16 %v1016_v29, %v1012_v11  ;;  %v2209_v39 = vpack.c.bf16 %v1016_v29, %v1015_v19  ;;  %v831_v40 = vpop.f32.mrf.mxu0  ;;  %v944_v41 = vpop.f32.mrf.mxu1 }
 0x140   : > { %v1018_v42 = vmax.f32 %v830_v34, 0.0  ;;  %v1020_v43 = vmax.f32 %v943_v35, 0.0  ;;  %v832_v44 = vadd.f32 %v831_v40, %v3026_v57  ;;  %v945_v45 = vadd.f32 %v944_v41, %v3028_v58 }
 0x141   : > { %1267 = vst [vmem:[%s3043_s11 + $0x10] sm:$0xff] %v2208_v37  ;;  %1268 = vst [vmem:[%s3043_s11 + $0x18] sm:$0xff] %v2209_v39  ;;  %1601 = vmatprep.mubr.bf16.mxu0 %v1074_v36  ;;  %1698 = vmatprep.mubr.bf16.mxu1 %v1076_v38  ;;  %v833_v46 = vpop.f32.mrf.mxu0  ;;  %v946_v47 = vpop.f32.mrf.mxu1 }
 0x142   : > { %v2210_v48 = vpack.c.bf16 %v1018_v42, %v1017_v32  ;;  %v2211_v49 = vpack.c.bf16 %v1020_v43, %v1019_v33  ;;  %v1021_v50 = vmax.f32 %v832_v44, 0.0  ;;  %v1023_v51 = vmax.f32 %v945_v45, 0.0  ;;  %1602 = vmatmul.mubr.bf16.vlgmr.msra.gmra.mxu0 %v1073_v26  ;;  %1699 = vmatmul.mubr.bf16.vlgmr.msra.gmra.mxu1 %v1075_v27 }
 0x143   : > { %v834_v52 = vadd.f32 %v833_v46, %v3030_v59  ;;  %v947_v53 = vadd.f32 %v946_v47, %v3032_v60  ;;  %v837_v54 = vpop.f32.mrf.mxu0  ;;  %v950_v0 = vpop.f32.mrf.mxu1 }
 0x144   : > { %1269 = vst [vmem:[%s3043_s11 + $0x20] sm:$0xff] %v2210_v48  ;;  %1270 = vst [vmem:[%s3043_s11 + $0x28] sm:$0xff] %v2211_v49  ;;  %v838_v55 = vadd.f32 %v837_v54, %v3026_v57  ;;  %v951_v56 = vadd.f32 %v950_v0, %v3028_v58  ;;  %v1077_v61 = vpack.c.bf16 %v1021_v50, %v1017_v32 }
 0x145   : > { %v1079_v62 = vpack.c.bf16 %v1023_v51, %v1019_v33  ;;  %v1022_v63 = vmax.f32 %v834_v52, 0.0  ;;  %v1024_v1 = vmax.f32 %v947_v53, 0.0  ;;  %v839_v2 = vpop.f32.mrf.mxu0  ;;  %v952_v3 = vpop.f32.mrf.mxu1 }
 0x146   : > { %v1025_v4 = vmax.f32 %v838_v55, 0.0  ;;  %v1027_v5 = vmax.f32 %v951_v56, 0.0  ;;  %v840_v6 = vadd.f32 %v839_v2, %v3030_v59  ;;  %v953_v7 = vadd.f32 %v952_v3, %v3032_v60 }
 0x147   : > { %v1078_v8 = vpack.c.bf16 %v1022_v63, %v1018_v42  ;;  %v2212_v9 = vpack.c.bf16 %v1022_v63, %v1021_v50  ;;  %v1080_v10 = vpack.c.bf16 %v1024_v1, %v1020_v43  ;;  %v2213_v11 = vpack.c.bf16 %v1024_v1, %v1023_v51  ;;  %v841_v12 = vpop.f32.mrf.mxu0  ;;  %v954_v13 = vpop.f32.mrf.mxu1 }
 0x148   : > { %v1026_v14 = vmax.f32 %v840_v6, 0.0  ;;  %v1028_v15 = vmax.f32 %v953_v7, 0.0  ;;  %v842_v16 = vadd.f32 %v841_v12, %v3026_v57  ;;  %v955_v17 = vadd.f32 %v954_v13, %v3028_v58 }
 0x149   : > { %1271 = vst [vmem:[%s3043_s11 + $0x30] sm:$0xff] %v2212_v9  ;;  %1272 = vst [vmem:[%s3043_s11 + $0x38] sm:$0xff] %v2213_v11  ;;  %1609 = vmatprep.mubr.bf16.mxu0 %v1078_v8  ;;  %1706 = vmatprep.mubr.bf16.mxu1 %v1080_v10  ;;  %v843_v18 = vpop.f32.mrf.mxu0  ;;  %v956_v19 = vpop.f32.mrf.mxu1 }
 0x14a   : > { %v2214_v20 = vpack.c.bf16 %v1026_v14, %v1025_v4  ;;  %v2215_v21 = vpack.c.bf16 %v1028_v15, %v1027_v5  ;;  %v1029_v22 = vmax.f32 %v842_v16, 0.0  ;;  %v1031_v23 = vmax.f32 %v955_v17, 0.0  ;;  %1610 = vmatmul.mubr.bf16.gmra.mxu0 %v1077_v61  ;;  %1707 = vmatmul.mubr.bf16.gmra.mxu1 %v1079_v62 }
 0x14b   : > { %v844_v24 = vadd.f32 %v843_v18, %v3030_v59  ;;  %v957_v25 = vadd.f32 %v956_v19, %v3032_v60  ;;  %v847_v26 = vpop.f32.mrf.mxu0  ;;  %v960_v27 = vpop.f32.mrf.mxu1 }
 0x14c   : > { %1273 = vst [vmem:[%s3043_s11 + $0x40] sm:$0xff] %v2214_v20  ;;  %1274 = vst [vmem:[%s3043_s11 + $0x48] sm:$0xff] %v2215_v21  ;;  %v848_v28 = vadd.f32 %v847_v26, %v3026_v57  ;;  %v961_v29 = vadd.f32 %v960_v27, %v3028_v58  ;;  %v1081_v30 = vpack.c.bf16 %v1029_v22, %v1025_v4 }
 0x14d   : > { %v1083_v31 = vpack.c.bf16 %v1031_v23, %v1027_v5  ;;  %v1030_v32 = vmax.f32 %v844_v24, 0.0  ;;  %v1032_v33 = vmax.f32 %v957_v25, 0.0  ;;  %v849_v34 = vpop.f32.mrf.mxu0  ;;  %v962_v35 = vpop.f32.mrf.mxu1 }
 0x14e   : > { %v1033_v36 = vmax.f32 %v848_v28, 0.0  ;;  %v1035_v37 = vmax.f32 %v961_v29, 0.0  ;;  %v850_v38 = vadd.f32 %v849_v34, %v3030_v59  ;;  %v963_v39 = vadd.f32 %v962_v35, %v3032_v60 }
 0x14f   : > { %v1082_v40 = vpack.c.bf16 %v1030_v32, %v1026_v14  ;;  %v2216_v41 = vpack.c.bf16 %v1030_v32, %v1029_v22  ;;  %v1084_v42 = vpack.c.bf16 %v1032_v33, %v1028_v15  ;;  %v2217_v43 = vpack.c.bf16 %v1032_v33, %v1031_v23  ;;  %v851_v44 = vpop.f32.mrf.mxu0  ;;  %v964_v45 = vpop.f32.mrf.mxu1 }
 0x150   : > { %v1034_v46 = vmax.f32 %v850_v38, 0.0  ;;  %v1036_v47 = vmax.f32 %v963_v39, 0.0  ;;  %v852_v48 = vadd.f32 %v851_v44, %v3026_v57  ;;  %v965_v49 = vadd.f32 %v964_v45, %v3028_v58 }
 0x151   : > { %1275 = vst [vmem:[%s3043_s11 + $0x50] sm:$0xff] %v2216_v41  ;;  %1276 = vst [vmem:[%s3043_s11 + $0x58] sm:$0xff] %v2217_v43  ;;  %1617 = vmatprep.mubr.bf16.mxu0 %v1082_v40  ;;  %1714 = vmatprep.mubr.bf16.mxu1 %v1084_v42  ;;  %v853_v50 = vpop.f32.mrf.mxu0  ;;  %v966_v51 = vpop.f32.mrf.mxu1 }
 0x152   : > { %v2218_v52 = vpack.c.bf16 %v1034_v46, %v1033_v36  ;;  %v2219_v53 = vpack.c.bf16 %v1036_v47, %v1035_v37  ;;  %v1037_v54 = vmax.f32 %v852_v48, 0.0  ;;  %v1039_v0 = vmax.f32 %v965_v49, 0.0  ;;  %1618 = vmatmul.mubr.bf16.gmra.mxu0 %v1081_v30  ;;  %1715 = vmatmul.mubr.bf16.gmra.mxu1 %v1083_v31 }
 0x153   : > { %v854_v55 = vadd.f32 %v853_v50, %v3030_v59  ;;  %v967_v56 = vadd.f32 %v966_v51, %v3032_v60  ;;  %v857_v61 = vpop.f32.mrf.mxu0  ;;  %v970_v62 = vpop.f32.mrf.mxu1 }
 0x154   : > { %1277 = vst [vmem:[%s3043_s11 + $0x60] sm:$0xff] %v2218_v52  ;;  %1278 = vst [vmem:[%s3043_s11 + $0x68] sm:$0xff] %v2219_v53  ;;  %v858_v63 = vadd.f32 %v857_v61, %v3026_v57  ;;  %v971_v1 = vadd.f32 %v970_v62, %v3028_v58  ;;  %v1085_v2 = vpack.c.bf16 %v1037_v54, %v1033_v36 }
 0x155   : > { %v1087_v3 = vpack.c.bf16 %v1039_v0, %v1035_v37  ;;  %v1038_v4 = vmax.f32 %v854_v55, 0.0  ;;  %v1040_v5 = vmax.f32 %v967_v56, 0.0  ;;  %v859_v6 = vpop.f32.mrf.mxu0  ;;  %v972_v7 = vpop.f32.mrf.mxu1 }
 0x156   : > { %v1041_v8 = vmax.f32 %v858_v63, 0.0  ;;  %v1043_v9 = vmax.f32 %v971_v1, 0.0  ;;  %v860_v10 = vadd.f32 %v859_v6, %v3030_v59  ;;  %v973_v11 = vadd.f32 %v972_v7, %v3032_v60 }
 0x157   : > { %v1086_v12 = vpack.c.bf16 %v1038_v4, %v1034_v46  ;;  %v2220_v13 = vpack.c.bf16 %v1038_v4, %v1037_v54  ;;  %v1088_v14 = vpack.c.bf16 %v1040_v5, %v1036_v47  ;;  %v2221_v15 = vpack.c.bf16 %v1040_v5, %v1039_v0  ;;  %v861_v16 = vpop.f32.mrf.mxu0  ;;  %v974_v17 = vpop.f32.mrf.mxu1 }
 0x158   : > { %v1042_v18 = vmax.f32 %v860_v10, 0.0  ;;  %v1044_v19 = vmax.f32 %v973_v11, 0.0  ;;  %v862_v20 = vadd.f32 %v861_v16, %v3026_v57  ;;  %v975_v21 = vadd.f32 %v974_v17, %v3028_v58 }
 0x159   : > { %1279 = vst [vmem:[%s3043_s11 + $0x70] sm:$0xff] %v2220_v13  ;;  %1280 = vst [vmem:[%s3043_s11 + $0x78] sm:$0xff] %v2221_v15  ;;  %1625 = vmatprep.mubr.bf16.mxu0 %v1086_v12  ;;  %1722 = vmatprep.mubr.bf16.mxu1 %v1088_v14  ;;  %v863_v22 = vpop.f32.mrf.mxu0  ;;  %v976_v23 = vpop.f32.mrf.mxu1 }
 0x15a   : > { %v2222_v24 = vpack.c.bf16 %v1042_v18, %v1041_v8  ;;  %v2223_v25 = vpack.c.bf16 %v1044_v19, %v1043_v9  ;;  %v1045_v26 = vmax.f32 %v862_v20, 0.0  ;;  %v1047_v27 = vmax.f32 %v975_v21, 0.0  ;;  %1626 = vmatmul.mubr.bf16.gmra.mxu0 %v1085_v2  ;;  %1723 = vmatmul.mubr.bf16.gmra.mxu1 %v1087_v3 }
 0x15b   : > { %v864_v28 = vadd.f32 %v863_v22, %v3030_v59  ;;  %v977_v29 = vadd.f32 %v976_v23, %v3032_v60  ;;  %v867_v30 = vpop.f32.mrf.mxu0  ;;  %v980_v31 = vpop.f32.mrf.mxu1 }
 0x15c   : > { %1281 = vst [vmem:[%s3043_s11 + $0x80] sm:$0xff] %v2222_v24  ;;  %1282 = vst [vmem:[%s3043_s11 + $0x88] sm:$0xff] %v2223_v25  ;;  %v868_v32 = vadd.f32 %v867_v30, %v3026_v57  ;;  %v981_v33 = vadd.f32 %v980_v31, %v3028_v58  ;;  %v1089_v34 = vpack.c.bf16 %v1045_v26, %v1041_v8 }
 0x15d   : > { %v1091_v35 = vpack.c.bf16 %v1047_v27, %v1043_v9  ;;  %v1046_v36 = vmax.f32 %v864_v28, 0.0  ;;  %v1048_v37 = vmax.f32 %v977_v29, 0.0  ;;  %v869_v38 = vpop.f32.mrf.mxu0  ;;  %v982_v39 = vpop.f32.mrf.mxu1 }
 0x15e   : > { %v1049_v40 = vmax.f32 %v868_v32, 0.0  ;;  %v1051_v41 = vmax.f32 %v981_v33, 0.0  ;;  %v870_v42 = vadd.f32 %v869_v38, %v3030_v59  ;;  %v983_v43 = vadd.f32 %v982_v39, %v3032_v60 }
 0x15f   : > { %v1090_v44 = vpack.c.bf16 %v1046_v36, %v1042_v18  ;;  %v2224_v45 = vpack.c.bf16 %v1046_v36, %v1045_v26  ;;  %v1092_v46 = vpack.c.bf16 %v1048_v37, %v1044_v19  ;;  %v2225_v47 = vpack.c.bf16 %v1048_v37, %v1047_v27  ;;  %v871_v48 = vpop.f32.mrf.mxu0  ;;  %v984_v49 = vpop.f32.mrf.mxu1 }
 0x160   : > { %v1050_v50 = vmax.f32 %v870_v42, 0.0  ;;  %v1052_v51 = vmax.f32 %v983_v43, 0.0  ;;  %v872_v52 = vadd.f32 %v871_v48, %v3026_v57  ;;  %v985_v53 = vadd.f32 %v984_v49, %v3028_v58 }
 0x161   : > { %1283 = vst [vmem:[%s3043_s11 + $0x90] sm:$0xff] %v2224_v45  ;;  %1284 = vst [vmem:[%s3043_s11 + $0x98] sm:$0xff] %v2225_v47  ;;  %1633 = vmatprep.mubr.bf16.mxu0 %v1090_v44  ;;  %1730 = vmatprep.mubr.bf16.mxu1 %v1092_v46  ;;  %v873_v54 = vpop.f32.mrf.mxu0  ;;  %v986_v0 = vpop.f32.mrf.mxu1 }
 0x162   : > { %v2226_v55 = vpack.c.bf16 %v1050_v50, %v1049_v40  ;;  %v2227_v56 = vpack.c.bf16 %v1052_v51, %v1051_v41  ;;  %v1053_v61 = vmax.f32 %v872_v52, 0.0  ;;  %v1055_v62 = vmax.f32 %v985_v53, 0.0  ;;  %1634 = vmatmul.mubr.bf16.gmra.mxu0 %v1089_v34  ;;  %1731 = vmatmul.mubr.bf16.gmra.mxu1 %v1091_v35 }
 0x163   : > { %v874_v63 = vadd.f32 %v873_v54, %v3030_v59  ;;  %v987_v1 = vadd.f32 %v986_v0, %v3032_v60  ;;  %v877_v2 = vpop.f32.mrf.mxu0  ;;  %v990_v3 = vpop.f32.mrf.mxu1 }
 0x164   : > { %1285 = vst [vmem:[%s3043_s11 + $0xa0] sm:$0xff] %v2226_v55  ;;  %1286 = vst [vmem:[%s3043_s11 + $0xa8] sm:$0xff] %v2227_v56  ;;  %v878_v4 = vadd.f32 %v877_v2, %v3026_v57  ;;  %v991_v5 = vadd.f32 %v990_v3, %v3028_v58  ;;  %v1093_v6 = vpack.c.bf16 %v1053_v61, %v1049_v40 }
 0x165   : > { %v1095_v7 = vpack.c.bf16 %v1055_v62, %v1051_v41  ;;  %v1054_v8 = vmax.f32 %v874_v63, 0.0  ;;  %v1056_v9 = vmax.f32 %v987_v1, 0.0  ;;  %v879_v10 = vpop.f32.mrf.mxu0  ;;  %v992_v11 = vpop.f32.mrf.mxu1 }
 0x166   : > { %v1057_v12 = vmax.f32 %v878_v4, 0.0  ;;  %v1059_v13 = vmax.f32 %v991_v5, 0.0  ;;  %v880_v14 = vadd.f32 %v879_v10, %v3030_v59  ;;  %v993_v15 = vadd.f32 %v992_v11, %v3032_v60 }
 0x167   : > { %v1094_v16 = vpack.c.bf16 %v1054_v8, %v1050_v50  ;;  %v2228_v17 = vpack.c.bf16 %v1054_v8, %v1053_v61  ;;  %v1096_v18 = vpack.c.bf16 %v1056_v9, %v1052_v51  ;;  %v2229_v19 = vpack.c.bf16 %v1056_v9, %v1055_v62  ;;  %v881_v20 = vpop.f32.mrf.mxu0  ;;  %v994_v21 = vpop.f32.mrf.mxu1 }
 0x168   : > { %v1058_v22 = vmax.f32 %v880_v14, 0.0  ;;  %v1060_v23 = vmax.f32 %v993_v15, 0.0  ;;  %v882_v24 = vadd.f32 %v881_v20, %v3026_v57  ;;  %v995_v25 = vadd.f32 %v994_v21, %v3028_v58 }
 0x169   : > { %1287 = vst [vmem:[%s3043_s11 + $0xb0] sm:$0xff] %v2228_v17  ;;  %1288 = vst [vmem:[%s3043_s11 + $0xb8] sm:$0xff] %v2229_v19  ;;  %1641 = vmatprep.mubr.bf16.mxu0 %v1094_v16  ;;  %1738 = vmatprep.mubr.bf16.mxu1 %v1096_v18  ;;  %v883_v26 = vpop.f32.mrf.mxu0  ;;  %v996_v27 = vpop.f32.mrf.mxu1 }
 0x16a   : > { %v2230_v28 = vpack.c.bf16 %v1058_v22, %v1057_v12  ;;  %v2231_v29 = vpack.c.bf16 %v1060_v23, %v1059_v13  ;;  %v1061_v30 = vmax.f32 %v882_v24, 0.0  ;;  %v1063_v31 = vmax.f32 %v995_v25, 0.0  ;;  %1642 = vmatmul.mubr.bf16.gmra.mxu0 %v1093_v6  ;;  %1739 = vmatmul.mubr.bf16.gmra.mxu1 %v1095_v7 }
 0x16b   : > { %v884_v32 = vadd.f32 %v883_v26, %v3030_v59  ;;  %v997_v33 = vadd.f32 %v996_v27, %v3032_v60  ;;  %v887_v34 = vpop.f32.mrf.mxu0  ;;  %v1000_v35 = vpop.f32.mrf.mxu1 }
 0x16c   : > { %1289 = vst [vmem:[%s3043_s11 + $0xc0] sm:$0xff] %v2230_v28  ;;  %1290 = vst [vmem:[%s3043_s11 + $0xc8] sm:$0xff] %v2231_v29  ;;  %v888_v36 = vadd.f32 %v887_v34, %v3026_v57  ;;  %v1001_v37 = vadd.f32 %v1000_v35, %v3028_v58  ;;  %v1097_v38 = vpack.c.bf16 %v1061_v30, %v1057_v12 }
 0x16d   : > { %v1099_v39 = vpack.c.bf16 %v1063_v31, %v1059_v13  ;;  %v1062_v40 = vmax.f32 %v884_v32, 0.0  ;;  %v1064_v41 = vmax.f32 %v997_v33, 0.0  ;;  %v889_v42 = vpop.f32.mrf.mxu0  ;;  %v1002_v43 = vpop.f32.mrf.mxu1 }
 0x16e   : > { %v1065_v44 = vmax.f32 %v888_v36, 0.0  ;;  %v1067_v45 = vmax.f32 %v1001_v37, 0.0  ;;  %v890_v46 = vadd.f32 %v889_v42, %v3030_v59  ;;  %v1003_v47 = vadd.f32 %v1002_v43, %v3032_v60 }
 0x16f   : > { %v1098_v48 = vpack.c.bf16 %v1062_v40, %v1058_v22  ;;  %v2232_v49 = vpack.c.bf16 %v1062_v40, %v1061_v30  ;;  %v1100_v50 = vpack.c.bf16 %v1064_v41, %v1060_v23  ;;  %v2233_v51 = vpack.c.bf16 %v1064_v41, %v1063_v31  ;;  %v891_v52 = vpop.f32.mrf.mxu0  ;;  %v1004_v53 = vpop.f32.mrf.mxu1 }
 0x170   : > { %v1066_v54 = vmax.f32 %v890_v46, 0.0  ;;  %v1068_v0 = vmax.f32 %v1003_v47, 0.0  ;;  %v892_v55 = vadd.f32 %v891_v52, %v3026_v57  ;;  %v1005_v56 = vadd.f32 %v1004_v53, %v3028_v58 }
 0x171   : > { %1291 = vst [vmem:[%s3043_s11 + $0xd0] sm:$0xff] %v2232_v49  ;;  %1292 = vst [vmem:[%s3043_s11 + $0xd8] sm:$0xff] %v2233_v51  ;;  %1649 = vmatprep.mubr.bf16.mxu0 %v1098_v48  ;;  %1746 = vmatprep.mubr.bf16.mxu1 %v1100_v50  ;;  %v893_v61 = vpop.f32.mrf.mxu0  ;;  %v1006_v62 = vpop.f32.mrf.mxu1 }
 0x172   : > { %v2234_v63 = vpack.c.bf16 %v1066_v54, %v1065_v44  ;;  %v2235_v1 = vpack.c.bf16 %v1068_v0, %v1067_v45  ;;  %1650 = vmatmul.mubr.bf16.gmra.mxu0 %v1097_v38  ;;  %1747 = vmatmul.mubr.bf16.gmra.mxu1 %v1099_v39  ;;  %v894_v2 = vadd.f32 %v893_v61, %v3030_v59  ;;  %v1069_v57 = vmax.f32 %v892_v55, 0.0 }
 0x173   : > { %v1007_v3 = vadd.f32 %v1006_v62, %v3032_v60  ;;  %v1071_v58 = vmax.f32 %v1005_v56, 0.0 }
 0x174   : > { %1293 = vst [vmem:[%s3043_s11 + $0xe0] sm:$0xff] %v2234_v63  ;;  %1294 = vst [vmem:[%s3043_s11 + $0xe8] sm:$0xff] %v2235_v1  ;;  %v1070_v4 = vmax.f32 %v894_v2, 0.0  ;;  %v1101_v10 = vpack.c.bf16 %v1069_v57, %v1065_v44 }
 0x175   : > { %v1072_v5 = vmax.f32 %v1007_v3, 0.0  ;;  %v1103_v11 = vpack.c.bf16 %v1071_v58, %v1067_v45 }
 0x176   : > { %v1102_v6 = vpack.c.bf16 %v1070_v4, %v1066_v54  ;;  %v2236_v7 = vpack.c.bf16 %v1070_v4, %v1069_v57 }
 0x177   : > { %v1104_v8 = vpack.c.bf16 %v1072_v5, %v1068_v0  ;;  %v2237_v9 = vpack.c.bf16 %v1072_v5, %v1071_v58 }
 0x178   : > { %1295 = vst [vmem:[%s3043_s11 + $0xf0] sm:$0xff] %v2236_v7  ;;  %1657 = vmatprep.mubr.bf16.mxu0 %v1102_v6 }
 0x179   : > { %1296 = vst [vmem:[%s3043_s11 + $0xf8] sm:$0xff] %v2237_v9  ;;  %1754 = vmatprep.mubr.bf16.mxu1 %v1104_v8 }
 0x17a   : > { %1658 = vmatmul.mubr.bf16.gmra.mxu0 %v1101_v10  ;;  %1755 = vmatmul.mubr.bf16.gmra.mxu1 %v1103_v11 }
 0x17b   : > { %2696 = shalt.err (!%p2693_p5)
}
 0x17c   : > { %s2697_s7 = scalar_lea.hbm %s3138_s14, 4096  ;;  %s2701_s11 = scalar_lea.hbm %s3267_s6, 8192 }
 0x17d   : > { %p2698_p10 = scmp.ne.s32.totalorder %s3138_s14, %s2697_s7  ;;  %p2702_p6 = scmp.lt.s32.totalorder %s3138_s14, %s3267_s6 }
 0x17e   : > { %p2703_p12 = scmp.lt.s32.totalorder %s2701_s11, %s2697_s7 }
 0x17f   : > { %p2699_p1 = pnand %p2698_p10, %p2945_p7 }
 0x180   : > { %p2704_p3 = por %p2703_p12, %p2702_p6 }
 0x181   : > { %p2700_p4 = pneg %p2699_p1 }
 0x183   : > { %p2705_p8 = pnand %p2704_p3, %p2700_p4 }
 0x185   : > { %2708 = shalt.err (!%p2705_p8)
}
 0x186   : > { %s2810_s18 = smov 256   ;;  %s2811_s27 = smov 16   ;;  %v3168_v16 = vld [vmem:[%s3262_s1] ss:$0 sm:$0xff] }
 0x187   : > { %2427 = dma.vmem_to_hbm [thread:$0]  (%p2945_p7), %s3140_s12, 4096, %s3138_s14, %s1859_s20, %s2810_s18, %s2810_s18, %s2811_s27  }
 0x188   : > { %s3173_s12 = scalar_lea.vmem [#allocation10], %s2053_s4  ;;  %s2238_s4 = sshll.u32 %s2789_s24, 11 }
 0x189   : > { %s1872_s14 = sshll.u32 %s3173_s12, 4  ;;  %s3209_s7 = scalar_lea.hbm %s3266_s5, %s2238_s4  ;;  %s3211_s14 = int_to_ptr.vmem [resolvable:$true] %s1872_s14 }
 0x18a   : > { %s1854_s9 = scalar_lea.sflag [#allocation6], %s2972_s17  ;;  %s2709_s28 = scalar_lea.vmem %s3211_s14, 2048 }
 0x18b   : > { %p2710_p9 = scmp.ne.s32.totalorder %s3211_s14, %s2709_s28  ;;  %s2812_s24 = smov [#allocation10]  }
 0x18c   : > { %s2713_s11 = sshll.u32 %s2812_s24, 4  ;;  %s2714_s11 = int_to_ptr.vmem [resolvable:$false] %s2713_s11 }
 0x18d   : > { %p2711_p11 = pnand %p2710_p9, %p2945_p7  ;;  %s2715_s30 = scalar_lea.vmem %s2714_s11, 4096 }
 0x18e   : > { %p2716_p13 = scmp.lt.s32.totalorder %s3211_s14, %s2714_s11  ;;  %p2717_p0 = scmp.lt.s32.totalorder %s2715_s30, %s2709_s28 }
 0x18f   : > { %p2712_p2 = pneg %p2711_p11 }
 0x190   : > { %p2718_p5 = por %p2717_p0, %p2716_p13 }
 0x192   : > { %p2719_p10 = pnand %p2718_p5, %p2712_p2 }
 0x202   : > { %v2304_v59 = vpop.f32.mrf.mxu0  ;;  %v2368_v60 = vpop.f32.mrf.mxu1 }
 0x204   : > { %v2305_v12 = vpop.f32.mrf.mxu0  ;;  %v2369_v13 = vpop.f32.mrf.mxu1 }
 0x205   : > { %v2306_v14 = vadd.f32 %v2305_v12, %v2304_v59  ;;  %v2370_v15 = vadd.f32 %v2369_v13, %v2368_v60 }
 0x206   : > { %v2307_v17 = vpop.f32.mrf.mxu0  ;;  %v2371_v18 = vpop.f32.mrf.mxu1 }
 0x207   : > { %v1701_v19 = vadd.f32 %v2370_v15, %v2306_v14 }
 0x208   : > { %v2308_v20 = vpop.f32.mrf.mxu0  ;;  %v2372_v21 = vpop.f32.mrf.mxu1 }
 0x209   : > { %v1821_v22 = vadd.f32 %v3168_v16, %v1701_v19  ;;  %v2309_v23 = vadd.f32 %v2308_v20, %v2307_v17  ;;  %v2373_v24 = vadd.f32 %v2372_v21, %v2371_v18 }
 0x20a   : > { %v2310_v25 = vpop.f32.mrf.mxu0  ;;  %v2374_v26 = vpop.f32.mrf.mxu1 }
 0x20b   : > { %1837 = vst [vmem:[%s3173_s12] sm:$0xff] %v1821_v22  ;;  %v1704_v27 = vadd.f32 %v2373_v24, %v2309_v23 }
 0x20c   : > { %v2311_v28 = vpop.f32.mrf.mxu0  ;;  %v2375_v29 = vpop.f32.mrf.mxu1 }
 0x20d   : > { %v1822_v30 = vadd.f32 %v3168_v16, %v1704_v27  ;;  %v2312_v31 = vadd.f32 %v2311_v28, %v2310_v25  ;;  %v2376_v32 = vadd.f32 %v2375_v29, %v2374_v26 }
 0x20e   : > { %v2313_v33 = vpop.f32.mrf.mxu0  ;;  %v2377_v34 = vpop.f32.mrf.mxu1 }
 0x20f   : > { %1838 = vst [vmem:[%s3173_s12 + $0x8] sm:$0xff] %v1822_v30  ;;  %v1709_v35 = vadd.f32 %v2376_v32, %v2312_v31 }
 0x210   : > { %v2314_v36 = vpop.f32.mrf.mxu0  ;;  %v2378_v37 = vpop.f32.mrf.mxu1 }
 0x211   : > { %v1823_v38 = vadd.f32 %v3168_v16, %v1709_v35  ;;  %v2315_v39 = vadd.f32 %v2314_v36, %v2313_v33  ;;  %v2379_v40 = vadd.f32 %v2378_v37, %v2377_v34 }
 0x212   : > { %v2316_v41 = vpop.f32.mrf.mxu0  ;;  %v2380_v42 = vpop.f32.mrf.mxu1 }
 0x213   : > { %1839 = vst [vmem:[%s3173_s12 + $0x10] sm:$0xff] %v1823_v38  ;;  %v1712_v43 = vadd.f32 %v2379_v40, %v2315_v39 }
 0x214   : > { %v2317_v44 = vpop.f32.mrf.mxu0  ;;  %v2381_v45 = vpop.f32.mrf.mxu1 }
 0x215   : > { %v1824_v46 = vadd.f32 %v3168_v16, %v1712_v43  ;;  %v2318_v47 = vadd.f32 %v2317_v44, %v2316_v41  ;;  %v2382_v48 = vadd.f32 %v2381_v45, %v2380_v42 }
 0x216   : > { %v2319_v49 = vpop.f32.mrf.mxu0  ;;  %v2383_v50 = vpop.f32.mrf.mxu1 }
 0x217   : > { %1840 = vst [vmem:[%s3173_s12 + $0x18] sm:$0xff] %v1824_v46  ;;  %v1717_v51 = vadd.f32 %v2382_v48, %v2318_v47 }
 0x218   : > { %v2320_v52 = vpop.f32.mrf.mxu0  ;;  %v2384_v53 = vpop.f32.mrf.mxu1 }
 0x219   : > { %v1825_v54 = vadd.f32 %v3168_v16, %v1717_v51  ;;  %v2321_v0 = vadd.f32 %v2320_v52, %v2319_v49  ;;  %v2385_v55 = vadd.f32 %v2384_v53, %v2383_v50 }
 0x21a   : > { %v2322_v56 = vpop.f32.mrf.mxu0  ;;  %v2386_v61 = vpop.f32.mrf.mxu1 }
 0x21b   : > { %1841 = vst [vmem:[%s3173_s12 + $0x20] sm:$0xff] %v1825_v54  ;;  %v1720_v62 = vadd.f32 %v2385_v55, %v2321_v0 }
 0x21c   : > { %v2323_v63 = vpop.f32.mrf.mxu0  ;;  %v2387_v1 = vpop.f32.mrf.mxu1 }
 0x21d   : > { %v1826_v2 = vadd.f32 %v3168_v16, %v1720_v62  ;;  %v2324_v3 = vadd.f32 %v2323_v63, %v2322_v56  ;;  %v2388_v57 = vadd.f32 %v2387_v1, %v2386_v61 }
 0x21e   : > { %v2325_v58 = vpop.f32.mrf.mxu0  ;;  %v2389_v4 = vpop.f32.mrf.mxu1 }
 0x21f   : > { %1842 = vst [vmem:[%s3173_s12 + $0x28] sm:$0xff] %v1826_v2  ;;  %v1725_v5 = vadd.f32 %v2388_v57, %v2324_v3 }
 0x220   : > { %v2326_v6 = vpop.f32.mrf.mxu0  ;;  %v2390_v7 = vpop.f32.mrf.mxu1 }
 0x221   : > { %v1827_v8 = vadd.f32 %v3168_v16, %v1725_v5  ;;  %v2327_v9 = vadd.f32 %v2326_v6, %v2325_v58  ;;  %v2391_v10 = vadd.f32 %v2390_v7, %v2389_v4 }
 0x222   : > { %v2328_v11 = vpop.f32.mrf.mxu0  ;;  %v2392_v59 = vpop.f32.mrf.mxu1 }
 0x223   : > { %1843 = vst [vmem:[%s3173_s12 + $0x30] sm:$0xff] %v1827_v8  ;;  %v1728_v60 = vadd.f32 %v2391_v10, %v2327_v9 }
 0x224   : > { %v2329_v12 = vpop.f32.mrf.mxu0  ;;  %v2393_v13 = vpop.f32.mrf.mxu1 }
 0x225   : > { %v1828_v14 = vadd.f32 %v3168_v16, %v1728_v60  ;;  %v2330_v15 = vadd.f32 %v2329_v12, %v2328_v11  ;;  %v2394_v17 = vadd.f32 %v2393_v13, %v2392_v59 }
 0x226   : > { %v2331_v18 = vpop.f32.mrf.mxu0  ;;  %v2395_v19 = vpop.f32.mrf.mxu1 }
 0x227   : > { %1844 = vst [vmem:[%s3173_s12 + $0x38] sm:$0xff] %v1828_v14  ;;  %v1733_v20 = vadd.f32 %v2394_v17, %v2330_v15 }
 0x228   : > { %v2332_v21 = vpop.f32.mrf.mxu0  ;;  %v2396_v22 = vpop.f32.mrf.mxu1 }
 0x229   : > { %v1829_v23 = vadd.f32 %v3168_v16, %v1733_v20  ;;  %v2333_v24 = vadd.f32 %v2332_v21, %v2331_v18  ;;  %v2397_v25 = vadd.f32 %v2396_v22, %v2395_v19 }
 0x22a   : > { %v2334_v26 = vpop.f32.mrf.mxu0  ;;  %v2398_v27 = vpop.f32.mrf.mxu1 }
 0x22b   : > { %1845 = vst [vmem:[%s3173_s12 + $0x40] sm:$0xff] %v1829_v23  ;;  %v1736_v28 = vadd.f32 %v2397_v25, %v2333_v24 }
 0x22c   : > { %v2335_v29 = vpop.f32.mrf.mxu0  ;;  %v2399_v30 = vpop.f32.mrf.mxu1 }
 0x22d   : > { %v1830_v31 = vadd.f32 %v3168_v16, %v1736_v28  ;;  %v2336_v32 = vadd.f32 %v2335_v29, %v2334_v26  ;;  %v2400_v33 = vadd.f32 %v2399_v30, %v2398_v27 }
 0x22e   : > { %v2337_v34 = vpop.f32.mrf.mxu0  ;;  %v2401_v35 = vpop.f32.mrf.mxu1 }
 0x22f   : > { %1846 = vst [vmem:[%s3173_s12 + $0x48] sm:$0xff] %v1830_v31  ;;  %v1741_v36 = vadd.f32 %v2400_v33, %v2336_v32 }
 0x230   : > { %v2338_v37 = vpop.f32.mrf.mxu0  ;;  %v2402_v38 = vpop.f32.mrf.mxu1 }
 0x231   : > { %v1831_v39 = vadd.f32 %v3168_v16, %v1741_v36  ;;  %v2339_v40 = vadd.f32 %v2338_v37, %v2337_v34  ;;  %v2403_v41 = vadd.f32 %v2402_v38, %v2401_v35 }
 0x232   : > { %v2340_v42 = vpop.f32.mrf.mxu0  ;;  %v2404_v43 = vpop.f32.mrf.mxu1 }
 0x233   : > { %1847 = vst [vmem:[%s3173_s12 + $0x50] sm:$0xff] %v1831_v39  ;;  %v1744_v44 = vadd.f32 %v2403_v41, %v2339_v40 }
 0x234   : > { %v2341_v45 = vpop.f32.mrf.mxu0  ;;  %v2405_v46 = vpop.f32.mrf.mxu1 }
 0x235   : > { %v1832_v47 = vadd.f32 %v3168_v16, %v1744_v44  ;;  %v2342_v48 = vadd.f32 %v2341_v45, %v2340_v42  ;;  %v2406_v49 = vadd.f32 %v2405_v46, %v2404_v43 }
 0x236   : > { %v2343_v50 = vpop.f32.mrf.mxu0  ;;  %v2407_v51 = vpop.f32.mrf.mxu1 }
 0x237   : > { %1848 = vst [vmem:[%s3173_s12 + $0x58] sm:$0xff] %v1832_v47  ;;  %v1749_v52 = vadd.f32 %v2406_v49, %v2342_v48 }
 0x238   : > { %v2344_v53 = vpop.f32.mrf.mxu0  ;;  %v2408_v54 = vpop.f32.mrf.mxu1 }
 0x239   : > { %v1833_v0 = vadd.f32 %v3168_v16, %v1749_v52  ;;  %v2345_v55 = vadd.f32 %v2344_v53, %v2343_v50  ;;  %v2409_v56 = vadd.f32 %v2408_v54, %v2407_v51 }
 0x23a   : > { %v2346_v61 = vpop.f32.mrf.mxu0  ;;  %v2410_v62 = vpop.f32.mrf.mxu1 }
 0x23b   : > { %1849 = vst [vmem:[%s3173_s12 + $0x60] sm:$0xff] %v1833_v0  ;;  %v1752_v63 = vadd.f32 %v2409_v56, %v2345_v55 }
 0x23c   : > { %v2347_v1 = vpop.f32.mrf.mxu0  ;;  %v2411_v2 = vpop.f32.mrf.mxu1 }
 0x23d   : > { %v1834_v3 = vadd.f32 %v3168_v16, %v1752_v63  ;;  %v2348_v57 = vadd.f32 %v2347_v1, %v2346_v61  ;;  %v2412_v58 = vadd.f32 %v2411_v2, %v2410_v62 }
 0x23e   : > { %v2349_v4 = vpop.f32.mrf.mxu0  ;;  %v2413_v5 = vpop.f32.mrf.mxu1 }
 0x23f   : > { %1850 = vst [vmem:[%s3173_s12 + $0x68] sm:$0xff] %v1834_v3  ;;  %v1757_v6 = vadd.f32 %v2412_v58, %v2348_v57 }
 0x240   : > { %v2350_v7 = vpop.f32.mrf.mxu0  ;;  %v2414_v8 = vpop.f32.mrf.mxu1 }
 0x241   : > { %v1835_v9 = vadd.f32 %v3168_v16, %v1757_v6  ;;  %v2351_v10 = vadd.f32 %v2350_v7, %v2349_v4  ;;  %v2415_v11 = vadd.f32 %v2414_v8, %v2413_v5 }
 0x243   : > { %1851 = vst [vmem:[%s3173_s12 + $0x70] sm:$0xff] %v1835_v9  ;;  %v1760_v59 = vadd.f32 %v2415_v11, %v2351_v10 }
 0x245   : > { %v1836_v60 = vadd.f32 %v3168_v16, %v1760_v59 }
 0x247   : > { %1852 = vst [vmem:[%s3173_s12 + $0x78] sm:$0xff] %v1836_v60 }
 0x248   : > { %2722 = shalt.err (!%p2719_p10)
}
 0x249   : > { %s2723_s15 = scalar_lea.hbm %s3209_s7, 2048  ;;  %s2727_s10 = scalar_lea.hbm %s3266_s5, 4096 }
 0x24a   : > { %p2724_p1 = scmp.ne.s32.totalorder %s3209_s7, %s2723_s15  ;;  %p2728_p12 = scmp.lt.s32.totalorder %s3209_s7, %s3266_s5 }
 0x24b   : > { %p2729_p3 = scmp.lt.s32.totalorder %s2727_s10, %s2723_s15 }
 0x24c   : > { %p2725_p4 = pnand %p2724_p1, %p2945_p7 }
 0x24d   : > { %p2730_p8 = por %p2729_p3, %p2728_p12 }
 0x24e   : > { %p2726_p6 = pneg %p2725_p4 }
 0x250   : > { %p2731_p9 = pnand %p2730_p8, %p2726_p6 }
 0x252   : > { %2734 = shalt.err (!%p2731_p9)
}
 0x253   : > { %s2813_s4 = smov 128   ;;  %s2814_s20 = smov 8  }
 0x254   : > { %2426 = dma.vmem_to_hbm [thread:$0]  (%p2945_p7), %s3211_s14, 2048, %s3209_s7, %s1854_s9, %s2813_s4, %s2813_s4, %s2814_s20  }
 0x255 PF: > { %s1906_s29 = sand.u32 1, %s2777_s21   ;;  %p3285_p11 = scmp.ne.s32.totalorder %s3276_s8, 0 }
 0x256   : > { %p3286_p2 = scmp.ge.s32.totalorder %s2797_s26, 2  ;;  %s1907_s28 = scalar_lea.sflag [#allocation6], %s1906_s29 }
 0x258   : > { %p2442_p13 = pnand %p3286_p2, %p3285_p11 }
 0x25a   : > { %p2443_p0 = pneg %p2442_p13 }
 0x25c   : > { %2768 = dma.done.wait (%p2443_p0), %s1907_s28, 2048  }
 0x25d   : > { %2770 = vsyncadd (%p2443_p0), %s1907_s28, 4294965248  ;;  %s1916_s24 = scalar_lea.sflag [#allocation12], %s1906_s29 }
 0x25e   : > { %2772 = dma.done.wait (%p2443_p0), %s1916_s24, 4096  }
 0x25f   : > { %2774 = vsyncadd (%p2443_p0), %s1916_s24, 4294963200  ;;  %s27_s26 = sadd.s32 1, %s2797_s26   ;;  %s3287_s21 = smov %s2781_s22 }
 0x260   : > { %p24_p5 = scmp.ge.s32.totalorder %s27_s26, 4   ;;  %s3288_s22 = smov %s2785_s23 }
 0x261   : > { %s3289_s23 = smov %s2954_s19  ;;  %s3290_s24 = smov %s2793_s25 }
 0x262   : > { %s3291_s25 = smov %s3293_s13  ;;  %26 = sbr.rel (!%p24_p5) target bundleno = 12 (0xc), region = 123 }
 0x267   :  { %1921 = vsyncpa [#allocation5], 1 }
 0x268   :  { %1923 = vsyncpa [#allocation5 + $0x1], 1 }
 0x269   :  { %1924 = vsyncpa [#allocation8], 1 }
 0x26a   :  { %1925 = vsyncpa [#allocation6], 1 }
 0x26b   :  { %1927 = vsyncpa [#allocation6 + $0x1], 1 }
 0x26c   :  { %1928 = vsyncpa [#allocation12], 1 }
 0x26d   :  { %1930 = vsyncpa [#allocation12 + $0x1], 1 }

</bundles_post_ra>
